<compile_context>
chip_gen: v6e
topology: v6e:2x2x1
jax: 0.10.0
libtpu: 0.0.40
codegen_flags: <defaults>
</compile_context>

<pallas_src>
import functools
import math

import jax
import jax.numpy as jnp
from jax import lax
from jax.experimental import pallas as pl
from jax.experimental.pallas import tpu as pltpu


# ----------------------------- tiling helper -----------------------------

def _pick_tile(dim, pref, align):
    """Largest multiple of `align` that divides `dim` and is <= pref; else `dim`."""
    if dim <= pref:
        return dim
    t = (pref // align) * align
    while t >= align:
        if dim % t == 0:
            return t
        t -= align
    return dim


# ----------------------------- Pallas kernels -----------------------------

def _matmul_kernel(x_ref, w_ref, *rest, has_bias, has_res):
    """out = [res +] x @ w [+ bias]   (K-tiled, f32 accumulator)."""
    o_ref, acc_ref = rest[-2], rest[-1]
    i = 0
    b_ref = rest[i] if has_bias else None
    if has_bias:
        i += 1
    res_ref = rest[i] if has_res else None

    @pl.when(pl.program_id(2) == 0)
    def _():
        acc_ref[...] = jnp.zeros_like(acc_ref)

    acc_ref[...] += jnp.dot(x_ref[...], w_ref[...],
                            preferred_element_type=jnp.float32)

    @pl.when(pl.program_id(2) == pl.num_programs(2) - 1)
    def _():
        out = acc_ref[...]
        if has_bias:
            out = out + b_ref[...].astype(jnp.float32)
        if has_res:
            out = out + res_ref[...].astype(jnp.float32)
        o_ref[...] = out.astype(o_ref.dtype)


def _ln_matmul_kernel(x_ref, g_ref, beta_ref, w_ref, o_ref, *, eps):
    # o = LayerNorm(x) @ w      (full-K tile; LN in f32, MXU in bf16, f32 acc)
    x = x_ref[...].astype(jnp.float32)
    mu = jnp.mean(x, axis=-1, keepdims=True)
    xc = x - mu
    var = jnp.mean(xc * xc, axis=-1, keepdims=True)
    xn = xc * lax.rsqrt(var + eps)
    xn = xn * g_ref[...].astype(jnp.float32) + beta_ref[...].astype(jnp.float32)
    o_ref[...] = jnp.dot(xn.astype(w_ref.dtype), w_ref[...],
                         preferred_element_type=jnp.float32).astype(o_ref.dtype)


def _mlp_upgate_kernel(x_ref, g_ref, beta_ref, upw_ref, upb_ref, gatew_ref, o_ref, *, eps):
    # o = (LN(x) @ up_w + up_b) * silu(x @ gate_w)   (gate reads the raw residual)
    x = x_ref[...].astype(jnp.float32)
    mu = jnp.mean(x, axis=-1, keepdims=True)
    xc = x - mu
    var = jnp.mean(xc * xc, axis=-1, keepdims=True)
    xn = xc * lax.rsqrt(var + eps)
    xn = xn * g_ref[...].astype(jnp.float32) + beta_ref[...].astype(jnp.float32)
    up = jnp.dot(xn.astype(upw_ref.dtype), upw_ref[...],
                 preferred_element_type=jnp.float32) + upb_ref[...].astype(jnp.float32)
    gate = jnp.dot(x_ref[...], gatew_ref[...], preferred_element_type=jnp.float32)
    o_ref[...] = (up * gate * jax.nn.sigmoid(gate)).astype(o_ref.dtype)


def _flash_attn_kernel(q_ref, k_ref, v_ref, o_ref, m_sc, l_sc, acc_sc,
                       *, scale, group, block_q, block_k):
    # One (batch, kv_head, q_block) tile, looped over kv blocks (grid axis 3).
    # All `group` query heads of this kv head are handled here (K/V loaded once).
    qi = pl.program_id(2)
    ki = pl.program_id(3)
    q_start = qi * block_q
    k_start = ki * block_k

    @pl.when(ki == 0)
    def _():
        m_sc[...] = jnp.full_like(m_sc, -1e30)
        l_sc[...] = jnp.zeros_like(l_sc)
        acc_sc[...] = jnp.zeros_like(acc_sc)

    @pl.when(k_start <= q_start + (block_q - 1))        # causal block skipping
    def _():
        k = k_ref[0, 0]                                  # (tk, dh) bf16
        v = v_ref[0, 0]                                  # (tk, dh) bf16
        row = lax.broadcasted_iota(jnp.int32, (block_q, block_k), 0) + q_start
        col = lax.broadcasted_iota(jnp.int32, (block_q, block_k), 1) + k_start
        mask = col <= row
        for h in range(group):                           # static unroll over GQA group
            q = q_ref[0, h]                              # (tq, dh) bf16
            s = lax.dot_general(q, k, (((1,), (1,)), ((), ())),
                                preferred_element_type=jnp.float32) * scale
            s = jnp.where(mask, s, jnp.float32(-1e30))   # mask/softmax stay in f32
            m_prev = m_sc[h]
            m_new = jnp.maximum(m_prev, jnp.max(s, axis=-1, keepdims=True))
            alpha = jnp.exp(m_prev - m_new)
            p = jnp.exp(s - m_new)
            l_sc[h] = alpha * l_sc[h] + jnp.sum(p, axis=-1, keepdims=True)
            acc_sc[h] = alpha * acc_sc[h] + jnp.dot(
                p.astype(v.dtype), v, preferred_element_type=jnp.float32)
            m_sc[h] = m_new

    @pl.when(ki == pl.num_programs(3) - 1)
    def _():
        for h in range(group):
            inv = pl.reciprocal(l_sc[h], approx=True)
            o_ref[0, h] = (acc_sc[h] * inv).astype(o_ref.dtype)


# ----------------------------- kernel wrappers -----------------------------

def matmul(x, w, b=None, res=None, *, out_dtype=None,
           tm_pref=256, tn_pref=512, tk_pref=512):
    """out = [res +] x @ w [+ b];  x: (M, K), w: (K, N) pre-transposed, b: (N,)."""
    m, k = x.shape
    _, n = w.shape
    out_dtype = out_dtype or x.dtype
    tm = _pick_tile(m, tm_pref, 8)
    tn = _pick_tile(n, tn_pref, 128)
    tk = _pick_tile(k, tk_pref, 128)
    grid = (m // tm, n // tn, k // tk)
    in_specs = [pl.BlockSpec((tm, tk), lambda i, j, kk: (i, kk)),
                pl.BlockSpec((tk, tn), lambda i, j, kk: (kk, j))]
    args = [x, w]
    if b is not None:
        in_specs.append(pl.BlockSpec((1, tn), lambda i, j, kk: (0, j)))
        args.append(b.reshape(1, n))
    if res is not None:
        in_specs.append(pl.BlockSpec((tm, tn), lambda i, j, kk: (i, j)))
        args.append(res)
    kernel = functools.partial(_matmul_kernel,
                               has_bias=b is not None, has_res=res is not None)
    return pl.pallas_call(
        kernel,
        out_shape=jax.ShapeDtypeStruct((m, n), out_dtype),
        grid=grid,
        in_specs=in_specs,
        out_specs=pl.BlockSpec((tm, tn), lambda i, j, kk: (i, j)),
        scratch_shapes=[pltpu.VMEM((tm, tn), jnp.float32)],
        compiler_params=pltpu.CompilerParams(
            dimension_semantics=("parallel", "parallel", "arbitrary")),
    )(*args)


def ln_matmul(x, g, beta, w, *, eps=1e-5, out_dtype=None, tm_pref=256, tn_pref=512):
    """LayerNorm(x) @ w  with w: (K, N) pre-transposed. Full-K tiles (LN needs the row)."""
    m, k = x.shape
    _, n = w.shape
    out_dtype = out_dtype or x.dtype
    tm = _pick_tile(m, tm_pref, 8)
    tn = _pick_tile(n, tn_pref, 128)
    grid = (m // tm, n // tn)
    return pl.pallas_call(
        functools.partial(_ln_matmul_kernel, eps=eps),
        out_shape=jax.ShapeDtypeStruct((m, n), out_dtype),
        grid=grid,
        in_specs=[pl.BlockSpec((tm, k), lambda i, j: (i, 0)),
                  pl.BlockSpec((1, k), lambda i, j: (0, 0)),
                  pl.BlockSpec((1, k), lambda i, j: (0, 0)),
                  pl.BlockSpec((k, tn), lambda i, j: (0, j))],
        out_specs=pl.BlockSpec((tm, tn), lambda i, j: (i, j)),
        compiler_params=pltpu.CompilerParams(
            dimension_semantics=("parallel", "parallel")),
    )(x, g.reshape(1, k), beta.reshape(1, k), w)


def mlp_up_gate(x, ln_g, ln_b, up_w, up_b, gate_w, *, eps=1e-5,
                tm_pref=256, tn_pref=512):
    """(LN(x) @ up_w + up_b) * silu(x @ gate_w)."""
    m, d = x.shape
    _, hid = up_w.shape
    tm = _pick_tile(m, tm_pref, 8)
    tn = _pick_tile(hid, tn_pref, 128)
    grid = (m // tm, hid // tn)
    return pl.pallas_call(
        functools.partial(_mlp_upgate_kernel, eps=eps),
        out_shape=jax.ShapeDtypeStruct((m, hid), x.dtype),
        grid=grid,
        in_specs=[pl.BlockSpec((tm, d), lambda i, j: (i, 0)),
                  pl.BlockSpec((1, d), lambda i, j: (0, 0)),
                  pl.BlockSpec((1, d), lambda i, j: (0, 0)),
                  pl.BlockSpec((d, tn), lambda i, j: (0, j)),
                  pl.BlockSpec((1, tn), lambda i, j: (0, j)),
                  pl.BlockSpec((d, tn), lambda i, j: (0, j))],
        out_specs=pl.BlockSpec((tm, tn), lambda i, j: (i, j)),
        compiler_params=pltpu.CompilerParams(
            dimension_semantics=("parallel", "parallel")),
    )(x, ln_g.reshape(1, d), ln_b.reshape(1, d), up_w, up_b.reshape(1, hid), gate_w)


def flash_attention(q, k, v):
    """q: (B, H, T, Dh); k, v: (B, KVH, T, Dh). Causal, GQA, flash-style over KV."""
    b, h, t, dh = q.shape
    kvh = k.shape[1]
    group = h // kvh
    scale = 1.0 / math.sqrt(dh)
    blk = _pick_tile(t, 128, 8)          # tq == tk (keeps diagonal blocks well-formed)
    nb = t // blk
    grid = (b, kvh, nb, nb)
    return pl.pallas_call(
        functools.partial(_flash_attn_kernel, scale=scale, group=group,
                          block_q=blk, block_k=blk),
        out_shape=jax.ShapeDtypeStruct((b, h, t, dh), q.dtype),
        grid=grid,
        in_specs=[
            pl.BlockSpec((1, group, blk, dh), lambda bi, gi, qi, ki: (bi, gi, qi, 0)),
            pl.BlockSpec((1, 1, blk, dh), lambda bi, gi, qi, ki: (bi, gi, ki, 0)),
            pl.BlockSpec((1, 1, blk, dh), lambda bi, gi, qi, ki: (bi, gi, ki, 0)),
        ],
        out_specs=pl.BlockSpec((1, group, blk, dh),
                               lambda bi, gi, qi, ki: (bi, gi, qi, 0)),
        scratch_shapes=[pltpu.VMEM((group, blk, 1), jnp.float32),
                        pltpu.VMEM((group, blk, 1), jnp.float32),
                        pltpu.VMEM((group, blk, dh), jnp.float32)],
        compiler_params=pltpu.CompilerParams(
            dimension_semantics=("parallel", "parallel", "parallel", "arbitrary")),
    )(q, k, v)


# ----------------------------- RoPE (glue JAX) -----------------------------

def precompute_rope_embeddings(dim, seq, theta=10000.0):
    position = jnp.broadcast_to(
        jnp.arange(seq, dtype=jnp.float32)[:, None], (seq, dim))
    exponent = (2 * (jnp.arange(dim) // 2)).astype(jnp.float32) / dim
    position = position / jnp.power(jnp.float32(theta), exponent)
    sin = jnp.sin(position[:, 0::2])
    cos = jnp.cos(position[:, 1::2])
    sin = jnp.stack([sin, sin], axis=-1).reshape(seq, dim)
    cos = jnp.stack([cos, cos], axis=-1).reshape(seq, dim)
    return sin, cos


def _rotate_interleaved(x):
    x_even = x[..., 0::2]
    x_odd = x[..., 1::2]
    return jnp.stack([-x_odd, x_even], axis=-1).reshape(x.shape)


def apply_rope(q, k, sin, cos):
    # Applied pre-head-split on the full (model-dim) table, exactly like the reference.
    t = k.shape[-2]
    kd = k.shape[-1]
    s, c = sin[:t], cos[:t]
    qf = q.astype(jnp.float32)
    kf = k.astype(jnp.float32)
    q_out = qf * c + _rotate_interleaved(qf) * s
    k_out = kf * c[:, :kd] + _rotate_interleaved(kf) * s[:, :kd]
    return q_out.astype(q.dtype), k_out.astype(k.dtype)


# ----------------------------- model -----------------------------

def init_params(key, cfg):
    d, heads, kv_heads = cfg["dim"], cfg["heads"], cfg["kv_heads"]
    hid, vocab, layers = cfg["hidden"], cfg["vocab"], cfg["layers"]
    dh = d // heads
    kvd = kv_heads * dh
    wdtype = jnp.bfloat16   # weights live in bf16 (MXU native, half the HBM traffic)

    def linear_w(k_, in_f, out_f):
        bound = 1.0 / math.sqrt(in_f)
        # stored pre-transposed: [in_features, out_features]
        return jax.random.uniform(k_, (in_f, out_f), jnp.float32,
                                  -bound, bound).astype(wdtype)

    keys = jax.random.split(key, 1 + 7 * layers)
    emb = (0.02 * jax.random.normal(keys[0], (vocab, d), jnp.float32)).astype(wdtype)
    params = {"emb": emb, "out_w": emb.T}    # tied output projection (same values)
    blocks = []
    ki = 1
    for _ in range(layers):
        q_w = linear_w(keys[ki + 0], d, d)
        k_w = linear_w(keys[ki + 1], d, kvd)
        v_w = linear_w(keys[ki + 2], d, kvd)
        blocks.append({
            "ln1_g": jnp.ones((d,), jnp.float32), "ln1_b": jnp.zeros((d,), jnp.float32),
            "qkv_w": jnp.concatenate([q_w, k_w, v_w], axis=1),   # (d, d + 2*kvd)
            "o_w": linear_w(keys[ki + 3], d, d),
            "mlp_ln_g": jnp.ones((d,), jnp.float32), "mlp_ln_b": jnp.zeros((d,), jnp.float32),
            "up_w": linear_w(keys[ki + 4], d, hid), "up_b": jnp.zeros((hid,), jnp.float32),
            "gate_w": linear_w(keys[ki + 5], d, hid),
            "down_w": linear_w(keys[ki + 6], hid, d), "down_b": jnp.zeros((d,), jnp.float32),
        })
        ki += 7
    params["norm_g"] = jnp.ones((d,), jnp.float32)
    params["norm_b"] = jnp.zeros((d,), jnp.float32)
    params["blocks"] = blocks
    return params


def block_forward(p, x, sin, cos, cfg):
    bsz, t, d = x.shape
    heads, kv_heads = cfg["heads"], cfg["kv_heads"]
    dh = d // heads
    kvd = kv_heads * dh

    xf = x.reshape(bsz * t, d)                                    # residual stream

    # --- attention path: fused LN1 + concatenated QKV projection ---
    # (qkv_bias=False; _init_weights zeroes biases anyway, so no bias term)
    qkv = ln_matmul(xf, p["ln1_g"], p["ln1_b"], p["qkv_w"])       # (M, d + 2*kvd)
    q = qkv[:, :d].reshape(bsz, t, d)
    k = qkv[:, d:d + kvd].reshape(bsz, t, kvd)
    v = qkv[:, d + kvd:].reshape(bsz, t, kvd)
    q, k = apply_rope(q, k, sin, cos)

    qh = q.reshape(bsz, t, heads, dh).transpose(0, 2, 1, 3)       # (B, H,   T, Dh)
    kh = k.reshape(bsz, t, kv_heads, dh).transpose(0, 2, 1, 3)    # (B, KVH, T, Dh)
    vh = v.reshape(bsz, t, kv_heads, dh).transpose(0, 2, 1, 3)
    attn = flash_attention(qh, kh, vh)                            # (B, H, T, Dh)
    attn = attn.transpose(0, 2, 1, 3).reshape(bsz * t, d)

    # o_proj with the residual add fused into the matmul epilogue
    xf2 = matmul(attn, p["o_w"], res=xf)                          # (M, d)

    # --- MLP: down( up(LN(x)) * silu(gate(x)) ); gate reads the raw residual x,
    #     exactly like the reference MLP.forward; residual fused into down-proj ---
    h = mlp_up_gate(xf2, p["mlp_ln_g"], p["mlp_ln_b"],
                    p["up_w"], p["up_b"], p["gate_w"])
    out = matmul(h, p["down_w"], p["down_b"], res=xf2)            # (M, d)
    return out.reshape(bsz, t, d)


def model_forward(params, tokens, sin, cos, cfg):
    bsz, t = tokens.shape
    d, vocab = cfg["dim"], cfg["vocab"]
    x = jnp.take(params["emb"], tokens, axis=0)     # embedding gather (glue), bf16
    for p in params["blocks"]:
        x = block_forward(p, x, sin, cos, cfg)
    xf = x.reshape(bsz * t, d)
    # final norm fused with the tied output projection; logits in f32
    logits = ln_matmul(xf, params["norm_g"], params["norm_b"], params["out_w"],
                       out_dtype=jnp.float32)
    return logits.reshape(bsz, t, vocab)


# TODO(synk): Model.generate() (host-side top-k sampling loop) and the optional
# attention `mask` argument (only the causal mask=None path) are not implemented.

if __name__ == "__main__":
    cfg = dict(vocab=64, dim=32, heads=4, kv_heads=2, hidden=64,
               layers=2, seq=8, theta=10000.0, qkv_bias=False)
    key = jax.random.PRNGKey(0)
    pkey, tkey = jax.random.split(key)
    params = init_params(pkey, cfg)
    sin, cos = precompute_rope_embeddings(cfg["dim"], cfg["seq"], cfg["theta"])
    tokens = jax.random.randint(tkey, (2, cfg["seq"]), 0, cfg["vocab"], dtype=jnp.int32)

    fwd = jax.jit(lambda p, tok, s, c: model_forward(p, tok, s, c, cfg))
    logits = jax.block_until_ready(fwd(params, tokens, sin, cos))

    assert logits.shape == (2, cfg["seq"], cfg["vocab"])
    assert bool(jnp.all(jnp.isfinite(logits)))
    print("KERNEL_OK")
</pallas_src>

<mosaic_0001>
module attributes {stable_mosaic.version = 11 : i64} {
  func.func @_ln_matmul_kernel(%arg0: i32, %arg1: i32, %arg2: memref<16x32xbf16, #tpu.memory_space<vmem>>, %arg3: memref<1x32xf32, #tpu.memory_space<vmem>>, %arg4: memref<1x32xf32, #tpu.memory_space<vmem>>, %arg5: memref<32x64xbf16, #tpu.memory_space<vmem>>, %arg6: memref<16x64xbf16, #tpu.memory_space<vmem>>) attributes {dimension_semantics = [#tpu.dimension_semantics<parallel>, #tpu.dimension_semantics<parallel>], iteration_bounds = array<i64: 1, 1>, scalar_prefetch = 0 : i64, scratch_operands = 0 : i64, tpu.core_type = #tpu.core_type<tc>, window_params = [{transform_indices = @transform_0, window_bounds = array<i64: 16, 32>}, {pipeline_mode = #tpu.pipeline_mode<synchronous>, transform_indices = @transform_1, window_bounds = array<i64: 1, 32>}, {pipeline_mode = #tpu.pipeline_mode<synchronous>, transform_indices = @transform_2, window_bounds = array<i64: 1, 32>}, {transform_indices = @transform_3, window_bounds = array<i64: 32, 64>}, {transform_indices = @transform_4, window_bounds = array<i64: 16, 64>}]} {
    %c0 = arith.constant 0 : index
    %c0_0 = arith.constant 0 : index
    %0 = vector.load %arg2[%c0, %c0_0] : memref<16x32xbf16, #tpu.memory_space<vmem>>, vector<16x32xbf16>
    %1 = arith.extf %0 : vector<16x32xbf16> to vector<16x32xf32>
    %cst = arith.constant dense<0.000000e+00> : vector<16xf32>
    %2 = vector.multi_reduction <add>, %1, %cst [1] : vector<16x32xf32> to vector<16xf32>
    %3 = vector.shape_cast %2 : vector<16xf32> to vector<16x1xf32>
    %cst_1 = arith.constant 3.200000e+01 : f32
    %4 = vector.broadcast %cst_1 : f32 to vector<16x1xf32>
    %5 = arith.divf %3, %4 : vector<16x1xf32>
    %6 = vector.broadcast %5 : vector<16x1xf32> to vector<16x32xf32>
    %7 = arith.subf %1, %6 : vector<16x32xf32>
    %8 = arith.mulf %7, %7 : vector<16x32xf32>
    %cst_2 = arith.constant dense<0.000000e+00> : vector<16xf32>
    %9 = vector.multi_reduction <add>, %8, %cst_2 [1] : vector<16x32xf32> to vector<16xf32>
    %10 = vector.shape_cast %9 : vector<16xf32> to vector<16x1xf32>
    %cst_3 = arith.constant 3.200000e+01 : f32
    %11 = vector.broadcast %cst_3 : f32 to vector<16x1xf32>
    %12 = arith.divf %10, %11 : vector<16x1xf32>
    %cst_4 = arith.constant 9.99999974E-6 : f32
    %13 = vector.broadcast %cst_4 : f32 to vector<16x1xf32>
    %14 = arith.addf %12, %13 : vector<16x1xf32>
    %15 = math.rsqrt %14 : vector<16x1xf32>
    %16 = vector.broadcast %15 : vector<16x1xf32> to vector<16x32xf32>
    %17 = arith.mulf %7, %16 : vector<16x32xf32>
    %c0_5 = arith.constant 0 : index
    %c0_6 = arith.constant 0 : index
    %18 = vector.load %arg3[%c0_5, %c0_6] : memref<1x32xf32, #tpu.memory_space<vmem>>, vector<1x32xf32>
    %19 = vector.broadcast %18 : vector<1x32xf32> to vector<16x32xf32>
    %20 = arith.mulf %17, %19 : vector<16x32xf32>
    %c0_7 = arith.constant 0 : index
    %c0_8 = arith.constant 0 : index
    %21 = vector.load %arg4[%c0_7, %c0_8] : memref<1x32xf32, #tpu.memory_space<vmem>>, vector<1x32xf32>
    %22 = vector.broadcast %21 : vector<1x32xf32> to vector<16x32xf32>
    %23 = arith.addf %20, %22 : vector<16x32xf32>
    %24 = arith.truncf %23 : vector<16x32xf32> to vector<16x32xbf16>
    %c0_9 = arith.constant 0 : index
    %c0_10 = arith.constant 0 : index
    %25 = vector.load %arg5[%c0_9, %c0_10] : memref<32x64xbf16, #tpu.memory_space<vmem>>, vector<32x64xbf16>
    %cst_11 = arith.constant dense<0.000000e+00> : vector<16x64xf32>
    %26 = tpu.matmul %24, %25, %cst_11 {dimension_numbers = #tpu.dot_dimension_numbers<[1], [0], [0], [1], [0, 0, 1, 1], [], []>} : vector<16x32xbf16>, vector<32x64xbf16>, vector<16x64xf32> -> vector<16x64xf32>
    %27 = arith.truncf %26 : vector<16x64xf32> to vector<16x64xbf16>
    %c0_12 = arith.constant 0 : index
    %c0_13 = arith.constant 0 : index
    %28 = vector.load %arg6[%c0_12, %c0_13] : memref<16x64xbf16, #tpu.memory_space<vmem>>, vector<16x64xbf16>
    tpu.vector_store %arg6[%c0_12, %c0_13], %27 {strides = array<i32>} : memref<16x64xbf16, #tpu.memory_space<vmem>>, vector<16x64xbf16>,
    return
  }
  func.func @transform_0(%arg0: i32, %arg1: i32) -> (i32, i32) {
    %c0_i32 = arith.constant 0 : i32
    %c0_i32_0 = arith.constant 0 : i32
    return %arg0, %c0_i32 : i32, i32
  }
  func.func @transform_1(%arg0: i32, %arg1: i32) -> (i32, i32) {
    %c0_i32 = arith.constant 0 : i32
    %c0_i32_0 = arith.constant 0 : i32
    %c0_i32_1 = arith.constant 0 : i32
    return %c0_i32, %c0_i32_0 : i32, i32
  }
  func.func @transform_2(%arg0: i32, %arg1: i32) -> (i32, i32) {
    %c0_i32 = arith.constant 0 : i32
    %c0_i32_0 = arith.constant 0 : i32
    %c0_i32_1 = arith.constant 0 : i32
    return %c0_i32, %c0_i32_0 : i32, i32
  }
  func.func @transform_3(%arg0: i32, %arg1: i32) -> (i32, i32) {
    %c0_i32 = arith.constant 0 : i32
    %c0_i32_0 = arith.constant 0 : i32
    return %c0_i32, %arg1 : i32, i32
  }
  func.func @transform_4(%arg0: i32, %arg1: i32) -> (i32, i32) {
    %c0_i32 = arith.constant 0 : i32
    return %arg0, %arg1 : i32, i32
  }
}

module attributes {stable_mosaic.version = 11 : i64} {
  func.func @_flash_attn_kernel(%arg0: i32, %arg1: i32, %arg2: i32, %arg3: i32, %arg4: memref<1x2x8x8xbf16, #tpu.memory_space<vmem>>, %arg5: memref<1x1x8x8xbf16, #tpu.memory_space<vmem>>, %arg6: memref<1x1x8x8xbf16, #tpu.memory_space<vmem>>, %arg7: memref<1x2x8x8xbf16, #tpu.memory_space<vmem>>, %arg8: memref<2x8x1xf32, #tpu.memory_space<vmem>>, %arg9: memref<2x8x1xf32, #tpu.memory_space<vmem>>, %arg10: memref<2x8x8xf32, #tpu.memory_space<vmem>>) attributes {dimension_semantics = [#tpu.dimension_semantics<parallel>, #tpu.dimension_semantics<parallel>, #tpu.dimension_semantics<parallel>, #tpu.dimension_semantics<arbitrary>], iteration_bounds = array<i64: 2, 2, 1, 1>, scalar_prefetch = 0 : i64, scratch_operands = 3 : i64, tpu.core_type = #tpu.core_type<tc>, window_params = [{transform_indices = @transform_0, window_bounds = array<i64: 1, 2, 8, 8>}, {transform_indices = @transform_1, window_bounds = array<i64: 1, 1, 8, 8>}, {transform_indices = @transform_2, window_bounds = array<i64: 1, 1, 8, 8>}, {transform_indices = @transform_3, window_bounds = array<i64: 1, 2, 8, 8>}]} {
    %c8_i32 = arith.constant 8 : i32
    %0 = arith.muli %arg2, %c8_i32 : i32
    %c8_i32_0 = arith.constant 8 : i32
    %1 = arith.muli %arg3, %c8_i32_0 : i32
    %c0_i32 = arith.constant 0 : i32
    %2 = arith.cmpi eq, %arg3, %c0_i32 : i32
    %3 = arith.extui %2 : i1 to i32
    %c0_i32_1 = arith.constant 0 : i32
    %4 = arith.cmpi ne, %3, %c0_i32_1 : i32
    scf.if %4 {
      %cst = arith.constant -1.000000e+30 : f32
      %12 = vector.broadcast %cst : f32 to vector<2x8x1xf32>
      %c0 = arith.constant 0 : index
      %c0_5 = arith.constant 0 : index
      %c0_6 = arith.constant 0 : index
      %13 = vector.load %arg8[%c0, %c0_5, %c0_6] : memref<2x8x1xf32, #tpu.memory_space<vmem>>, vector<2x8x1xf32>
      tpu.vector_store %arg8[%c0, %c0_5, %c0_6], %12 {strides = array<i32>} : memref<2x8x1xf32, #tpu.memory_space<vmem>>, vector<2x8x1xf32>,
      %cst_7 = arith.constant 0.000000e+00 : f32
      %14 = vector.broadcast %cst_7 : f32 to vector<2x8x1xf32>
      %c0_8 = arith.constant 0 : index
      %c0_9 = arith.constant 0 : index
      %c0_10 = arith.constant 0 : index
      %15 = vector.load %arg9[%c0_8, %c0_9, %c0_10] : memref<2x8x1xf32, #tpu.memory_space<vmem>>, vector<2x8x1xf32>
      tpu.vector_store %arg9[%c0_8, %c0_9, %c0_10], %14 {strides = array<i32>} : memref<2x8x1xf32, #tpu.memory_space<vmem>>, vector<2x8x1xf32>,
      %cst_11 = arith.constant 0.000000e+00 : f32
      %16 = vector.broadcast %cst_11 : f32 to vector<2x8x8xf32>
      %c0_12 = arith.constant 0 : index
      %c0_13 = arith.constant 0 : index
      %c0_14 = arith.constant 0 : index
      %17 = vector.load %arg10[%c0_12, %c0_13, %c0_14] : memref<2x8x8xf32, #tpu.memory_space<vmem>>, vector<2x8x8xf32>
      tpu.vector_store %arg10[%c0_12, %c0_13, %c0_14], %16 {strides = array<i32>} : memref<2x8x8xf32, #tpu.memory_space<vmem>>, vector<2x8x8xf32>,
    } else {
    }
    %c7_i32 = arith.constant 7 : i32
    %5 = arith.addi %0, %c7_i32 : i32
    %6 = arith.cmpi sle, %1, %5 : i32
    %7 = arith.extui %6 : i1 to i32
    %c0_i32_2 = arith.constant 0 : i32
    %8 = arith.cmpi ne, %7, %c0_i32_2 : i32
    scf.if %8 {
      %c0 = arith.constant 0 : index
      %c0_5 = arith.constant 0 : index
      %c0_6 = arith.constant 0 : index
      %c0_7 = arith.constant 0 : index
      %12 = vector.load %arg5[%c0, %c0_5, %c0_6, %c0_7] : memref<1x1x8x8xbf16, #tpu.memory_space<vmem>>, vector<1x1x8x8xbf16>
      %13 = vector.shape_cast %12 : vector<1x1x8x8xbf16> to vector<8x8xbf16>
      %c0_8 = arith.constant 0 : index
      %c0_9 = arith.constant 0 : index
      %c0_10 = arith.constant 0 : index
      %c0_11 = arith.constant 0 : index
      %14 = vector.load %arg6[%c0_8, %c0_9, %c0_10, %c0_11] : memref<1x1x8x8xbf16, #tpu.memory_space<vmem>>, vector<1x1x8x8xbf16>
      %15 = vector.shape_cast %14 : vector<1x1x8x8xbf16> to vector<8x8xbf16>
      %16 = tpu.iota {dimensions = array<i32: 0>} : vector<8x8xi32>
      %17 = vector.broadcast %0 : i32 to vector<8x8xi32>
      %18 = arith.addi %16, %17 : vector<8x8xi32>
      %19 = tpu.iota {dimensions = array<i32: 1>} : vector<8x8xi32>
      %20 = vector.broadcast %1 : i32 to vector<8x8xi32>
      %21 = arith.addi %19, %20 : vector<8x8xi32>
      %22 = arith.cmpi sle, %21, %18 : vector<8x8xi32>
      %c0_12 = arith.constant 0 : index
      %c0_13 = arith.constant 0 : index
      %c0_14 = arith.constant 0 : index
      %c0_15 = arith.constant 0 : index
      %23 = vector.load %arg4[%c0_12, %c0_13, %c0_14, %c0_15] : memref<1x2x8x8xbf16, #tpu.memory_space<vmem>>, vector<1x1x8x8xbf16>
      %24 = vector.shape_cast %23 : vector<1x1x8x8xbf16> to vector<8x8xbf16>
      %cst = arith.constant dense<0.000000e+00> : vector<8x8xf32>
      %25 = tpu.matmul %24, %13, %cst {dimension_numbers = #tpu.dot_dimension_numbers<[1], [1], [0], [0], [0, 0, 1, 0], [], []>} : vector<8x8xbf16>, vector<8x8xbf16>, vector<8x8xf32> -> vector<8x8xf32>
      %cst_16 = arith.constant 0.353553385 : f32
      %26 = vector.broadcast %cst_16 : f32 to vector<8x8xf32>
      %27 = arith.mulf %25, %26 : vector<8x8xf32>
      %cst_17 = arith.constant -1.000000e+30 : f32
      %28 = vector.broadcast %cst_17 : f32 to vector<8x8xf32>
      %29 = arith.select %22, %27, %28 : vector<8x8xi1>, vector<8x8xf32>
      %c0_18 = arith.constant 0 : index
      %c0_19 = arith.constant 0 : index
      %c0_20 = arith.constant 0 : index
      %30 = vector.load %arg8[%c0_18, %c0_19, %c0_20] : memref<2x8x1xf32, #tpu.memory_space<vmem>>, vector<1x8x1xf32>
      %31 = vector.shape_cast %30 : vector<1x8x1xf32> to vector<8x1xf32>
      %cst_21 = arith.constant dense<0xFF800000> : vector<8xf32>
      %32 = vector.multi_reduction <maximumf>, %29, %cst_21 [1] : vector<8x8xf32> to vector<8xf32>
      %33 = vector.shape_cast %32 : vector<8xf32> to vector<8x1xf32>
      %34 = arith.maximumf %31, %33 : vector<8x1xf32>
      %35 = arith.subf %31, %34 : vector<8x1xf32>
      %36 = math.exp %35 : vector<8x1xf32>
      %37 = vector.broadcast %34 : vector<8x1xf32> to vector<8x8xf32>
      %38 = arith.subf %29, %37 : vector<8x8xf32>
      %39 = math.exp %38 : vector<8x8xf32>
      %c0_22 = arith.constant 0 : index
      %c0_23 = arith.constant 0 : index
      %c0_24 = arith.constant 0 : index
      %40 = vector.load %arg9[%c0_22, %c0_23, %c0_24] : memref<2x8x1xf32, #tpu.memory_space<vmem>>, vector<1x8x1xf32>
      %41 = vector.shape_cast %40 : vector<1x8x1xf32> to vector<8x1xf32>
      %42 = arith.mulf %36, %41 : vector<8x1xf32>
      %cst_25 = arith.constant dense<0.000000e+00> : vector<8xf32>
      %43 = vector.multi_reduction <add>, %39, %cst_25 [1] : vector<8x8xf32> to vector<8xf32>
      %44 = vector.shape_cast %43 : vector<8xf32> to vector<8x1xf32>
      %45 = arith.addf %42, %44 : vector<8x1xf32>
      %c0_26 = arith.constant 0 : index
      %c0_27 = arith.constant 0 : index
      %c0_28 = arith.constant 0 : index
      %46 = vector.load %arg9[%c0_26, %c0_27, %c0_28] : memref<2x8x1xf32, #tpu.memory_space<vmem>>, vector<1x8x1xf32>
      %47 = vector.shape_cast %46 : vector<1x8x1xf32> to vector<8x1xf32>
      %48 = vector.shape_cast %45 : vector<8x1xf32> to vector<1x8x1xf32>
      tpu.vector_store %arg9[%c0_26, %c0_27, %c0_28], %48 {strides = array<i32>} : memref<2x8x1xf32, #tpu.memory_space<vmem>>, vector<1x8x1xf32>,
      %c0_29 = arith.constant 0 : index
      %c0_30 = arith.constant 0 : index
      %c0_31 = arith.constant 0 : index
      %49 = vector.load %arg10[%c0_29, %c0_30, %c0_31] : memref<2x8x8xf32, #tpu.memory_space<vmem>>, vector<1x8x8xf32>
      %50 = vector.shape_cast %49 : vector<1x8x8xf32> to vector<8x8xf32>
      %51 = vector.broadcast %36 : vector<8x1xf32> to vector<8x8xf32>
      %52 = arith.mulf %51, %50 : vector<8x8xf32>
      %53 = arith.truncf %39 : vector<8x8xf32> to vector<8x8xbf16>
      %cst_32 = arith.constant dense<0.000000e+00> : vector<8x8xf32>
      %54 = tpu.matmul %53, %15, %cst_32 {dimension_numbers = #tpu.dot_dimension_numbers<[1], [0], [0], [1], [0, 0, 1, 1], [], []>} : vector<8x8xbf16>, vector<8x8xbf16>, vector<8x8xf32> -> vector<8x8xf32>
      %55 = arith.addf %52, %54 : vector<8x8xf32>
      %c0_33 = arith.constant 0 : index
      %c0_34 = arith.constant 0 : index
      %c0_35 = arith.constant 0 : index
      %56 = vector.load %arg10[%c0_33, %c0_34, %c0_35] : memref<2x8x8xf32, #tpu.memory_space<vmem>>, vector<1x8x8xf32>
      %57 = vector.shape_cast %56 : vector<1x8x8xf32> to vector<8x8xf32>
      %58 = vector.shape_cast %55 : vector<8x8xf32> to vector<1x8x8xf32>
      tpu.vector_store %arg10[%c0_33, %c0_34, %c0_35], %58 {strides = array<i32>} : memref<2x8x8xf32, #tpu.memory_space<vmem>>, vector<1x8x8xf32>,
      %c0_36 = arith.constant 0 : index
      %c0_37 = arith.constant 0 : index
      %c0_38 = arith.constant 0 : index
      %59 = vector.load %arg8[%c0_36, %c0_37, %c0_38] : memref<2x8x1xf32, #tpu.memory_space<vmem>>, vector<1x8x1xf32>
      %60 = vector.shape_cast %59 : vector<1x8x1xf32> to vector<8x1xf32>
      %61 = vector.shape_cast %34 : vector<8x1xf32> to vector<1x8x1xf32>
      tpu.vector_store %arg8[%c0_36, %c0_37, %c0_38], %61 {strides = array<i32>} : memref<2x8x1xf32, #tpu.memory_space<vmem>>, vector<1x8x1xf32>,
      %c0_39 = arith.constant 0 : index
      %c1 = arith.constant 1 : index
      %c0_40 = arith.constant 0 : index
      %c0_41 = arith.constant 0 : index
      %62 = vector.load %arg4[%c0_39, %c1, %c0_40, %c0_41] : memref<1x2x8x8xbf16, #tpu.memory_space<vmem>>, vector<1x1x8x8xbf16>
      %63 = vector.shape_cast %62 : vector<1x1x8x8xbf16> to vector<8x8xbf16>
      %cst_42 = arith.constant dense<0.000000e+00> : vector<8x8xf32>
      %64 = tpu.matmul %63, %13, %cst_42 {dimension_numbers = #tpu.dot_dimension_numbers<[1], [1], [0], [0], [0, 0, 1, 0], [], []>} : vector<8x8xbf16>, vector<8x8xbf16>, vector<8x8xf32> -> vector<8x8xf32>
      %cst_43 = arith.constant 0.353553385 : f32
      %65 = vector.broadcast %cst_43 : f32 to vector<8x8xf32>
      %66 = arith.mulf %64, %65 : vector<8x8xf32>
      %cst_44 = arith.constant -1.000000e+30 : f32
      %67 = vector.broadcast %cst_44 : f32 to vector<8x8xf32>
      %68 = arith.select %22, %66, %67 : vector<8x8xi1>, vector<8x8xf32>
      %c1_45 = arith.constant 1 : index
      %c0_46 = arith.constant 0 : index
      %c0_47 = arith.constant 0 : index
      %69 = vector.load %arg8[%c1_45, %c0_46, %c0_47] : memref<2x8x1xf32, #tpu.memory_space<vmem>>, vector<1x8x1xf32>
      %70 = vector.shape_cast %69 : vector<1x8x1xf32> to vector<8x1xf32>
      %cst_48 = arith.constant dense<0xFF800000> : vector<8xf32>
      %71 = vector.multi_reduction <maximumf>, %68, %cst_48 [1] : vector<8x8xf32> to vector<8xf32>
      %72 = vector.shape_cast %71 : vector<8xf32> to vector<8x1xf32>
      %73 = arith.maximumf %70, %72 : vector<8x1xf32>
      %74 = arith.subf %70, %73 : vector<8x1xf32>
      %75 = math.exp %74 : vector<8x1xf32>
      %76 = vector.broadcast %73 : vector<8x1xf32> to vector<8x8xf32>
      %77 = arith.subf %68, %76 : vector<8x8xf32>
      %78 = math.exp %77 : vector<8x8xf32>
      %c1_49 = arith.constant 1 : index
      %c0_50 = arith.constant 0 : index
      %c0_51 = arith.constant 0 : index
      %79 = vector.load %arg9[%c1_49, %c0_50, %c0_51] : memref<2x8x1xf32, #tpu.memory_space<vmem>>, vector<1x8x1xf32>
      %80 = vector.shape_cast %79 : vector<1x8x1xf32> to vector<8x1xf32>
      %81 = arith.mulf %75, %80 : vector<8x1xf32>
      %cst_52 = arith.constant dense<0.000000e+00> : vector<8xf32>
      %82 = vector.multi_reduction <add>, %78, %cst_52 [1] : vector<8x8xf32> to vector<8xf32>
      %83 = vector.shape_cast %82 : vector<8xf32> to vector<8x1xf32>
      %84 = arith.addf %81, %83 : vector<8x1xf32>
      %c1_53 = arith.constant 1 : index
      %c0_54 = arith.constant 0 : index
      %c0_55 = arith.constant 0 : index
      %85 = vector.load %arg9[%c1_53, %c0_54, %c0_55] : memref<2x8x1xf32, #tpu.memory_space<vmem>>, vector<1x8x1xf32>
      %86 = vector.shape_cast %85 : vector<1x8x1xf32> to vector<8x1xf32>
      %87 = vector.shape_cast %84 : vector<8x1xf32> to vector<1x8x1xf32>
      tpu.vector_store %arg9[%c1_53, %c0_54, %c0_55], %87 {strides = array<i32>} : memref<2x8x1xf32, #tpu.memory_space<vmem>>, vector<1x8x1xf32>,
      %c1_56 = arith.constant 1 : index
      %c0_57 = arith.constant 0 : index
      %c0_58 = arith.constant 0 : index
      %88 = vector.load %arg10[%c1_56, %c0_57, %c0_58] : memref<2x8x8xf32, #tpu.memory_space<vmem>>, vector<1x8x8xf32>
      %89 = vector.shape_cast %88 : vector<1x8x8xf32> to vector<8x8xf32>
      %90 = vector.broadcast %75 : vector<8x1xf32> to vector<8x8xf32>
      %91 = arith.mulf %90, %89 : vector<8x8xf32>
      %92 = arith.truncf %78 : vector<8x8xf32> to vector<8x8xbf16>
      %cst_59 = arith.constant dense<0.000000e+00> : vector<8x8xf32>
      %93 = tpu.matmul %92, %15, %cst_59 {dimension_numbers = #tpu.dot_dimension_numbers<[1], [0], [0], [1], [0, 0, 1, 1], [], []>} : vector<8x8xbf16>, vector<8x8xbf16>, vector<8x8xf32> -> vector<8x8xf32>
      %94 = arith.addf %91, %93 : vector<8x8xf32>
      %c1_60 = arith.constant 1 : index
      %c0_61 = arith.constant 0 : index
      %c0_62 = arith.constant 0 : index
      %95 = vector.load %arg10[%c1_60, %c0_61, %c0_62] : memref<2x8x8xf32, #tpu.memory_space<vmem>>, vector<1x8x8xf32>
      %96 = vector.shape_cast %95 : vector<1x8x8xf32> to vector<8x8xf32>
      %97 = vector.shape_cast %94 : vector<8x8xf32> to vector<1x8x8xf32>
      tpu.vector_store %arg10[%c1_60, %c0_61, %c0_62], %97 {strides = array<i32>} : memref<2x8x8xf32, #tpu.memory_space<vmem>>, vector<1x8x8xf32>,
      %c1_63 = arith.constant 1 : index
      %c0_64 = arith.constant 0 : index
      %c0_65 = arith.constant 0 : index
      %98 = vector.load %arg8[%c1_63, %c0_64, %c0_65] : memref<2x8x1xf32, #tpu.memory_space<vmem>>, vector<1x8x1xf32>
      %99 = vector.shape_cast %98 : vector<1x8x1xf32> to vector<8x1xf32>
      %100 = vector.shape_cast %73 : vector<8x1xf32> to vector<1x8x1xf32>
      tpu.vector_store %arg8[%c1_63, %c0_64, %c0_65], %100 {strides = array<i32>} : memref<2x8x1xf32, #tpu.memory_space<vmem>>, vector<1x8x1xf32>,
    } else {
    }
    %c0_i32_3 = arith.constant 0 : i32
    %9 = arith.cmpi eq, %arg3, %c0_i32_3 : i32
    %10 = arith.extui %9 : i1 to i32
    %c0_i32_4 = arith.constant 0 : i32
    %11 = arith.cmpi ne, %10, %c0_i32_4 : i32
    scf.if %11 {
      %c0 = arith.constant 0 : index
      %c0_5 = arith.constant 0 : index
      %c0_6 = arith.constant 0 : index
      %12 = vector.load %arg9[%c0, %c0_5, %c0_6] : memref<2x8x1xf32, #tpu.memory_space<vmem>>, vector<1x8x1xf32>
      %13 = vector.shape_cast %12 : vector<1x8x1xf32> to vector<8x1xf32>
      %14 = tpu.reciprocal %13 {approx = true} : vector<8x1xf32> -> vector<8x1xf32>
      %c0_7 = arith.constant 0 : index
      %c0_8 = arith.constant 0 : index
      %c0_9 = arith.constant 0 : index
      %15 = vector.load %arg10[%c0_7, %c0_8, %c0_9] : memref<2x8x8xf32, #tpu.memory_space<vmem>>, vector<1x8x8xf32>
      %16 = vector.shape_cast %15 : vector<1x8x8xf32> to vector<8x8xf32>
      %17 = vector.broadcast %14 : vector<8x1xf32> to vector<8x8xf32>
      %18 = arith.mulf %16, %17 : vector<8x8xf32>
      %19 = arith.truncf %18 : vector<8x8xf32> to vector<8x8xbf16>
      %c0_10 = arith.constant 0 : index
      %c0_11 = arith.constant 0 : index
      %c0_12 = arith.constant 0 : index
      %c0_13 = arith.constant 0 : index
      %20 = vector.load %arg7[%c0_10, %c0_11, %c0_12, %c0_13] : memref<1x2x8x8xbf16, #tpu.memory_space<vmem>>, vector<1x1x8x8xbf16>
      %21 = vector.shape_cast %20 : vector<1x1x8x8xbf16> to vector<8x8xbf16>
      %22 = vector.shape_cast %19 : vector<8x8xbf16> to vector<1x1x8x8xbf16>
      tpu.vector_store %arg7[%c0_10, %c0_11, %c0_12, %c0_13], %22 {strides = array<i32>} : memref<1x2x8x8xbf16, #tpu.memory_space<vmem>>, vector<1x1x8x8xbf16>,
      %c1 = arith.constant 1 : index
      %c0_14 = arith.constant 0 : index
      %c0_15 = arith.constant 0 : index
      %23 = vector.load %arg9[%c1, %c0_14, %c0_15] : memref<2x8x1xf32, #tpu.memory_space<vmem>>, vector<1x8x1xf32>
      %24 = vector.shape_cast %23 : vector<1x8x1xf32> to vector<8x1xf32>
      %25 = tpu.reciprocal %24 {approx = true} : vector<8x1xf32> -> vector<8x1xf32>
      %c1_16 = arith.constant 1 : index
      %c0_17 = arith.constant 0 : index
      %c0_18 = arith.constant 0 : index
      %26 = vector.load %arg10[%c1_16, %c0_17, %c0_18] : memref<2x8x8xf32, #tpu.memory_space<vmem>>, vector<1x8x8xf32>
      %27 = vector.shape_cast %26 : vector<1x8x8xf32> to vector<8x8xf32>
      %28 = vector.broadcast %25 : vector<8x1xf32> to vector<8x8xf32>
      %29 = arith.mulf %27, %28 : vector<8x8xf32>
      %30 = arith.truncf %29 : vector<8x8xf32> to vector<8x8xbf16>
      %c0_19 = arith.constant 0 : index
      %c1_20 = arith.constant 1 : index
      %c0_21 = arith.constant 0 : index
      %c0_22 = arith.constant 0 : index
      %31 = vector.load %arg7[%c0_19, %c1_20, %c0_21, %c0_22] : memref<1x2x8x8xbf16, #tpu.memory_space<vmem>>, vector<1x1x8x8xbf16>
      %32 = vector.shape_cast %31 : vector<1x1x8x8xbf16> to vector<8x8xbf16>
      %33 = vector.shape_cast %30 : vector<8x8xbf16> to vector<1x1x8x8xbf16>
      tpu.vector_store %arg7[%c0_19, %c1_20, %c0_21, %c0_22], %33 {strides = array<i32>} : memref<1x2x8x8xbf16, #tpu.memory_space<vmem>>, vector<1x1x8x8xbf16>,
    } else {
    }
    return
  }
  func.func @transform_0(%arg0: i32, %arg1: i32, %arg2: i32, %arg3: i32) -> (i32, i32, i32, i32) {
    %c0_i32 = arith.constant 0 : i32
    %c0_i32_0 = arith.constant 0 : i32
    return %arg0, %arg1, %arg2, %c0_i32 : i32, i32, i32, i32
  }
  func.func @transform_1(%arg0: i32, %arg1: i32, %arg2: i32, %arg3: i32) -> (i32, i32, i32, i32) {
    %c0_i32 = arith.constant 0 : i32
    %c0_i32_0 = arith.constant 0 : i32
    return %arg0, %arg1, %arg3, %c0_i32 : i32, i32, i32, i32
  }
  func.func @transform_2(%arg0: i32, %arg1: i32, %arg2: i32, %arg3: i32) -> (i32, i32, i32, i32) {
    %c0_i32 = arith.constant 0 : i32
    %c0_i32_0 = arith.constant 0 : i32
    return %arg0, %arg1, %arg3, %c0_i32 : i32, i32, i32, i32
  }
  func.func @transform_3(%arg0: i32, %arg1: i32, %arg2: i32, %arg3: i32) -> (i32, i32, i32, i32) {
    %c0_i32 = arith.constant 0 : i32
    %c0_i32_0 = arith.constant 0 : i32
    return %arg0, %arg1, %arg2, %c0_i32 : i32, i32, i32, i32
  }
}

module attributes {stable_mosaic.version = 11 : i64} {
  func.func @_matmul_kernel(%arg0: i32, %arg1: i32, %arg2: i32, %arg3: memref<16x64xbf16, #tpu.memory_space<vmem>>, %arg4: memref<64x32xbf16, #tpu.memory_space<vmem>>, %arg5: memref<1x32xf32, #tpu.memory_space<vmem>>, %arg6: memref<16x32xbf16, #tpu.memory_space<vmem>>, %arg7: memref<16x32xbf16, #tpu.memory_space<vmem>>, %arg8: memref<16x32xf32, #tpu.memory_space<vmem>>) attributes {dimension_semantics = [#tpu.dimension_semantics<parallel>, #tpu.dimension_semantics<parallel>, #tpu.dimension_semantics<arbitrary>], iteration_bounds = array<i64: 1, 1, 1>, scalar_prefetch = 0 : i64, scratch_operands = 1 : i64, tpu.core_type = #tpu.core_type<tc>, window_params = [{transform_indices = @transform_0, window_bounds = array<i64: 16, 64>}, {transform_indices = @transform_1, window_bounds = array<i64: 64, 32>}, {transform_indices = @transform_2, window_bounds = array<i64: 1, 32>}, {transform_indices = @transform_3, window_bounds = array<i64: 16, 32>}, {transform_indices = @transform_4, window_bounds = array<i64: 16, 32>}]} {
    %c0_i32 = arith.constant 0 : i32
    %0 = arith.cmpi eq, %arg2, %c0_i32 : i32
    %1 = arith.extui %0 : i1 to i32
    %c0_i32_0 = arith.constant 0 : i32
    %2 = arith.cmpi ne, %1, %c0_i32_0 : i32
    scf.if %2 {
      %cst_10 = arith.constant 0.000000e+00 : f32
      %12 = vector.broadcast %cst_10 : f32 to vector<16x32xf32>
      %c0_11 = arith.constant 0 : index
      %c0_12 = arith.constant 0 : index
      %13 = vector.load %arg8[%c0_11, %c0_12] : memref<16x32xf32, #tpu.memory_space<vmem>>, vector<16x32xf32>
      tpu.vector_store %arg8[%c0_11, %c0_12], %12 {strides = array<i32>} : memref<16x32xf32, #tpu.memory_space<vmem>>, vector<16x32xf32>,
    } else {
    }
    %c0 = arith.constant 0 : index
    %c0_1 = arith.constant 0 : index
    %3 = vector.load %arg8[%c0, %c0_1] : memref<16x32xf32, #tpu.memory_space<vmem>>, vector<16x32xf32>
    %c0_2 = arith.constant 0 : index
    %c0_3 = arith.constant 0 : index
    %4 = vector.load %arg3[%c0_2, %c0_3] : memref<16x64xbf16, #tpu.memory_space<vmem>>, vector<16x64xbf16>
    %c0_4 = arith.constant 0 : index
    %c0_5 = arith.constant 0 : index
    %5 = vector.load %arg4[%c0_4, %c0_5] : memref<64x32xbf16, #tpu.memory_space<vmem>>, vector<64x32xbf16>
    %cst = arith.constant dense<0.000000e+00> : vector<16x32xf32>
    %6 = tpu.matmul %4, %5, %cst {dimension_numbers = #tpu.dot_dimension_numbers<[1], [0], [0], [1], [0, 0, 1, 1], [], []>} : vector<16x64xbf16>, vector<64x32xbf16>, vector<16x32xf32> -> vector<16x32xf32>
    %7 = arith.addf %3, %6 : vector<16x32xf32>
    %c0_6 = arith.constant 0 : index
    %c0_7 = arith.constant 0 : index
    %8 = vector.load %arg8[%c0_6, %c0_7] : memref<16x32xf32, #tpu.memory_space<vmem>>, vector<16x32xf32>
    tpu.vector_store %arg8[%c0_6, %c0_7], %7 {strides = array<i32>} : memref<16x32xf32, #tpu.memory_space<vmem>>, vector<16x32xf32>,
    %c0_i32_8 = arith.constant 0 : i32
    %9 = arith.cmpi eq, %arg2, %c0_i32_8 : i32
    %10 = arith.extui %9 : i1 to i32
    %c0_i32_9 = arith.constant 0 : i32
    %11 = arith.cmpi ne, %10, %c0_i32_9 : i32
    scf.if %11 {
      %c0_10 = arith.constant 0 : index
      %c0_11 = arith.constant 0 : index
      %12 = vector.load %arg8[%c0_10, %c0_11] : memref<16x32xf32, #tpu.memory_space<vmem>>, vector<16x32xf32>
      %c0_12 = arith.constant 0 : index
      %c0_13 = arith.constant 0 : index
      %13 = vector.load %arg5[%c0_12, %c0_13] : memref<1x32xf32, #tpu.memory_space<vmem>>, vector<1x32xf32>
      %14 = vector.broadcast %13 : vector<1x32xf32> to vector<16x32xf32>
      %15 = arith.addf %12, %14 : vector<16x32xf32>
      %c0_14 = arith.constant 0 : index
      %c0_15 = arith.constant 0 : index
      %16 = vector.load %arg6[%c0_14, %c0_15] : memref<16x32xbf16, #tpu.memory_space<vmem>>, vector<16x32xbf16>
      %17 = arith.extf %16 : vector<16x32xbf16> to vector<16x32xf32>
      %18 = arith.addf %15, %17 : vector<16x32xf32>
      %19 = arith.truncf %18 : vector<16x32xf32> to vector<16x32xbf16>
      %c0_16 = arith.constant 0 : index
      %c0_17 = arith.constant 0 : index
      %20 = vector.load %arg7[%c0_16, %c0_17] : memref<16x32xbf16, #tpu.memory_space<vmem>>, vector<16x32xbf16>
      tpu.vector_store %arg7[%c0_16, %c0_17], %19 {strides = array<i32>} : memref<16x32xbf16, #tpu.memory_space<vmem>>, vector<16x32xbf16>,
    } else {
    }
    return
  }
  func.func @transform_0(%arg0: i32, %arg1: i32, %arg2: i32) -> (i32, i32) {
    %c0_i32 = arith.constant 0 : i32
    return %arg0, %arg2 : i32, i32
  }
  func.func @transform_1(%arg0: i32, %arg1: i32, %arg2: i32) -> (i32, i32) {
    %c0_i32 = arith.constant 0 : i32
    return %arg2, %arg1 : i32, i32
  }
  func.func @transform_2(%arg0: i32, %arg1: i32, %arg2: i32) -> (i32, i32) {
    %c0_i32 = arith.constant 0 : i32
    %c0_i32_0 = arith.constant 0 : i32
    return %c0_i32, %arg1 : i32, i32
  }
  func.func @transform_3(%arg0: i32, %arg1: i32, %arg2: i32) -> (i32, i32) {
    %c0_i32 = arith.constant 0 : i32
    return %arg0, %arg1 : i32, i32
  }
  func.func @transform_4(%arg0: i32, %arg1: i32, %arg2: i32) -> (i32, i32) {
    %c0_i32 = arith.constant 0 : i32
    return %arg0, %arg1 : i32, i32
  }
}

module attributes {stable_mosaic.version = 11 : i64} {
  func.func @_mlp_upgate_kernel(%arg0: i32, %arg1: i32, %arg2: memref<16x32xbf16, #tpu.memory_space<vmem>>, %arg3: memref<1x32xf32, #tpu.memory_space<vmem>>, %arg4: memref<1x32xf32, #tpu.memory_space<vmem>>, %arg5: memref<32x64xbf16, #tpu.memory_space<vmem>>, %arg6: memref<1x64xf32, #tpu.memory_space<vmem>>, %arg7: memref<32x64xbf16, #tpu.memory_space<vmem>>, %arg8: memref<16x64xbf16, #tpu.memory_space<vmem>>) attributes {dimension_semantics = [#tpu.dimension_semantics<parallel>, #tpu.dimension_semantics<parallel>], iteration_bounds = array<i64: 1, 1>, scalar_prefetch = 0 : i64, scratch_operands = 0 : i64, tpu.core_type = #tpu.core_type<tc>, window_params = [{transform_indices = @transform_0, window_bounds = array<i64: 16, 32>}, {pipeline_mode = #tpu.pipeline_mode<synchronous>, transform_indices = @transform_1, window_bounds = array<i64: 1, 32>}, {pipeline_mode = #tpu.pipeline_mode<synchronous>, transform_indices = @transform_2, window_bounds = array<i64: 1, 32>}, {transform_indices = @transform_3, window_bounds = array<i64: 32, 64>}, {transform_indices = @transform_4, window_bounds = array<i64: 1, 64>}, {transform_indices = @transform_5, window_bounds = array<i64: 32, 64>}, {transform_indices = @transform_6, window_bounds = array<i64: 16, 64>}]} {
    %c0 = arith.constant 0 : index
    %c0_0 = arith.constant 0 : index
    %0 = vector.load %arg2[%c0, %c0_0] : memref<16x32xbf16, #tpu.memory_space<vmem>>, vector<16x32xbf16>
    %1 = arith.extf %0 : vector<16x32xbf16> to vector<16x32xf32>
    %cst = arith.constant dense<0.000000e+00> : vector<16xf32>
    %2 = vector.multi_reduction <add>, %1, %cst [1] : vector<16x32xf32> to vector<16xf32>
    %3 = vector.shape_cast %2 : vector<16xf32> to vector<16x1xf32>
    %cst_1 = arith.constant 3.200000e+01 : f32
    %4 = vector.broadcast %cst_1 : f32 to vector<16x1xf32>
    %5 = arith.divf %3, %4 : vector<16x1xf32>
    %6 = vector.broadcast %5 : vector<16x1xf32> to vector<16x32xf32>
    %7 = arith.subf %1, %6 : vector<16x32xf32>
    %8 = arith.mulf %7, %7 : vector<16x32xf32>
    %cst_2 = arith.constant dense<0.000000e+00> : vector<16xf32>
    %9 = vector.multi_reduction <add>, %8, %cst_2 [1] : vector<16x32xf32> to vector<16xf32>
    %10 = vector.shape_cast %9 : vector<16xf32> to vector<16x1xf32>
    %cst_3 = arith.constant 3.200000e+01 : f32
    %11 = vector.broadcast %cst_3 : f32 to vector<16x1xf32>
    %12 = arith.divf %10, %11 : vector<16x1xf32>
    %cst_4 = arith.constant 9.99999974E-6 : f32
    %13 = vector.broadcast %cst_4 : f32 to vector<16x1xf32>
    %14 = arith.addf %12, %13 : vector<16x1xf32>
    %15 = math.rsqrt %14 : vector<16x1xf32>
    %16 = vector.broadcast %15 : vector<16x1xf32> to vector<16x32xf32>
    %17 = arith.mulf %7, %16 : vector<16x32xf32>
    %c0_5 = arith.constant 0 : index
    %c0_6 = arith.constant 0 : index
    %18 = vector.load %arg3[%c0_5, %c0_6] : memref<1x32xf32, #tpu.memory_space<vmem>>, vector<1x32xf32>
    %19 = vector.broadcast %18 : vector<1x32xf32> to vector<16x32xf32>
    %20 = arith.mulf %17, %19 : vector<16x32xf32>
    %c0_7 = arith.constant 0 : index
    %c0_8 = arith.constant 0 : index
    %21 = vector.load %arg4[%c0_7, %c0_8] : memref<1x32xf32, #tpu.memory_space<vmem>>, vector<1x32xf32>
    %22 = vector.broadcast %21 : vector<1x32xf32> to vector<16x32xf32>
    %23 = arith.addf %20, %22 : vector<16x32xf32>
    %24 = arith.truncf %23 : vector<16x32xf32> to vector<16x32xbf16>
    %c0_9 = arith.constant 0 : index
    %c0_10 = arith.constant 0 : index
    %25 = vector.load %arg5[%c0_9, %c0_10] : memref<32x64xbf16, #tpu.memory_space<vmem>>, vector<32x64xbf16>
    %cst_11 = arith.constant dense<0.000000e+00> : vector<16x64xf32>
    %26 = tpu.matmul %24, %25, %cst_11 {dimension_numbers = #tpu.dot_dimension_numbers<[1], [0], [0], [1], [0, 0, 1, 1], [], []>} : vector<16x32xbf16>, vector<32x64xbf16>, vector<16x64xf32> -> vector<16x64xf32>
    %c0_12 = arith.constant 0 : index
    %c0_13 = arith.constant 0 : index
    %27 = vector.load %arg6[%c0_12, %c0_13] : memref<1x64xf32, #tpu.memory_space<vmem>>, vector<1x64xf32>
    %28 = vector.broadcast %27 : vector<1x64xf32> to vector<16x64xf32>
    %29 = arith.addf %26, %28 : vector<16x64xf32>
    %c0_14 = arith.constant 0 : index
    %c0_15 = arith.constant 0 : index
    %30 = vector.load %arg2[%c0_14, %c0_15] : memref<16x32xbf16, #tpu.memory_space<vmem>>, vector<16x32xbf16>
    %c0_16 = arith.constant 0 : index
    %c0_17 = arith.constant 0 : index
    %31 = vector.load %arg7[%c0_16, %c0_17] : memref<32x64xbf16, #tpu.memory_space<vmem>>, vector<32x64xbf16>
    %cst_18 = arith.constant dense<0.000000e+00> : vector<16x64xf32>
    %32 = tpu.matmul %30, %31, %cst_18 {dimension_numbers = #tpu.dot_dimension_numbers<[1], [0], [0], [1], [0, 0, 1, 1], [], []>} : vector<16x32xbf16>, vector<32x64xbf16>, vector<16x64xf32> -> vector<16x64xf32>
    %33 = arith.mulf %29, %32 : vector<16x64xf32>
    %34 = arith.negf %32 : vector<16x64xf32>
    %35 = math.exp %34 : vector<16x64xf32>
    %cst_19 = arith.constant 1.000000e+00 : f32
    %36 = vector.broadcast %cst_19 : f32 to vector<16x64xf32>
    %37 = arith.addf %36, %35 : vector<16x64xf32>
    %38 = arith.divf %36, %37 : vector<16x64xf32>
    %39 = arith.mulf %33, %38 : vector<16x64xf32>
    %40 = arith.truncf %39 : vector<16x64xf32> to vector<16x64xbf16>
    %c0_20 = arith.constant 0 : index
    %c0_21 = arith.constant 0 : index
    %41 = vector.load %arg8[%c0_20, %c0_21] : memref<16x64xbf16, #tpu.memory_space<vmem>>, vector<16x64xbf16>
    tpu.vector_store %arg8[%c0_20, %c0_21], %40 {strides = array<i32>} : memref<16x64xbf16, #tpu.memory_space<vmem>>, vector<16x64xbf16>,
    return
  }
  func.func @transform_0(%arg0: i32, %arg1: i32) -> (i32, i32) {
    %c0_i32 = arith.constant 0 : i32
    %c0_i32_0 = arith.constant 0 : i32
    return %arg0, %c0_i32 : i32, i32
  }
  func.func @transform_1(%arg0: i32, %arg1: i32) -> (i32, i32) {
    %c0_i32 = arith.constant 0 : i32
    %c0_i32_0 = arith.constant 0 : i32
    %c0_i32_1 = arith.constant 0 : i32
    return %c0_i32, %c0_i32_0 : i32, i32
  }
  func.func @transform_2(%arg0: i32, %arg1: i32) -> (i32, i32) {
    %c0_i32 = arith.constant 0 : i32
    %c0_i32_0 = arith.constant 0 : i32
    %c0_i32_1 = arith.constant 0 : i32
    return %c0_i32, %c0_i32_0 : i32, i32
  }
  func.func @transform_3(%arg0: i32, %arg1: i32) -> (i32, i32) {
    %c0_i32 = arith.constant 0 : i32
    %c0_i32_0 = arith.constant 0 : i32
    return %c0_i32, %arg1 : i32, i32
  }
  func.func @transform_4(%arg0: i32, %arg1: i32) -> (i32, i32) {
    %c0_i32 = arith.constant 0 : i32
    %c0_i32_0 = arith.constant 0 : i32
    return %c0_i32, %arg1 : i32, i32
  }
  func.func @transform_5(%arg0: i32, %arg1: i32) -> (i32, i32) {
    %c0_i32 = arith.constant 0 : i32
    %c0_i32_0 = arith.constant 0 : i32
    return %c0_i32, %arg1 : i32, i32
  }
  func.func @transform_6(%arg0: i32, %arg1: i32) -> (i32, i32) {
    %c0_i32 = arith.constant 0 : i32
    return %arg0, %arg1 : i32, i32
  }
}

module attributes {stable_mosaic.version = 11 : i64} {
  func.func @_matmul_kernel(%arg0: i32, %arg1: i32, %arg2: i32, %arg3: memref<16x32xbf16, #tpu.memory_space<vmem>>, %arg4: memref<32x32xbf16, #tpu.memory_space<vmem>>, %arg5: memref<16x32xbf16, #tpu.memory_space<vmem>>, %arg6: memref<16x32xbf16, #tpu.memory_space<vmem>>, %arg7: memref<16x32xf32, #tpu.memory_space<vmem>>) attributes {dimension_semantics = [#tpu.dimension_semantics<parallel>, #tpu.dimension_semantics<parallel>, #tpu.dimension_semantics<arbitrary>], iteration_bounds = array<i64: 1, 1, 1>, scalar_prefetch = 0 : i64, scratch_operands = 1 : i64, tpu.core_type = #tpu.core_type<tc>, window_params = [{transform_indices = @transform_0, window_bounds = array<i64: 16, 32>}, {transform_indices = @transform_1, window_bounds = array<i64: 32, 32>}, {transform_indices = @transform_2, window_bounds = array<i64: 16, 32>}, {transform_indices = @transform_3, window_bounds = array<i64: 16, 32>}]} {
    %c0_i32 = arith.constant 0 : i32
    %0 = arith.cmpi eq, %arg2, %c0_i32 : i32
    %1 = arith.extui %0 : i1 to i32
    %c0_i32_0 = arith.constant 0 : i32
    %2 = arith.cmpi ne, %1, %c0_i32_0 : i32
    scf.if %2 {
      %cst_10 = arith.constant 0.000000e+00 : f32
      %12 = vector.broadcast %cst_10 : f32 to vector<16x32xf32>
      %c0_11 = arith.constant 0 : index
      %c0_12 = arith.constant 0 : index
      %13 = vector.load %arg7[%c0_11, %c0_12] : memref<16x32xf32, #tpu.memory_space<vmem>>, vector<16x32xf32>
      tpu.vector_store %arg7[%c0_11, %c0_12], %12 {strides = array<i32>} : memref<16x32xf32, #tpu.memory_space<vmem>>, vector<16x32xf32>,
    } else {
    }
    %c0 = arith.constant 0 : index
    %c0_1 = arith.constant 0 : index
    %3 = vector.load %arg7[%c0, %c0_1] : memref<16x32xf32, #tpu.memory_space<vmem>>, vector<16x32xf32>
    %c0_2 = arith.constant 0 : index
    %c0_3 = arith.constant 0 : index
    %4 = vector.load %arg3[%c0_2, %c0_3] : memref<16x32xbf16, #tpu.memory_space<vmem>>, vector<16x32xbf16>
    %c0_4 = arith.constant 0 : index
    %c0_5 = arith.constant 0 : index
    %5 = vector.load %arg4[%c0_4, %c0_5] : memref<32x32xbf16, #tpu.memory_space<vmem>>, vector<32x32xbf16>
    %cst = arith.constant dense<0.000000e+00> : vector<16x32xf32>
    %6 = tpu.matmul %4, %5, %cst {dimension_numbers = #tpu.dot_dimension_numbers<[1], [0], [0], [1], [0, 0, 1, 1], [], []>} : vector<16x32xbf16>, vector<32x32xbf16>, vector<16x32xf32> -> vector<16x32xf32>
    %7 = arith.addf %3, %6 : vector<16x32xf32>
    %c0_6 = arith.constant 0 : index
    %c0_7 = arith.constant 0 : index
    %8 = vector.load %arg7[%c0_6, %c0_7] : memref<16x32xf32, #tpu.memory_space<vmem>>, vector<16x32xf32>
    tpu.vector_store %arg7[%c0_6, %c0_7], %7 {strides = array<i32>} : memref<16x32xf32, #tpu.memory_space<vmem>>, vector<16x32xf32>,
    %c0_i32_8 = arith.constant 0 : i32
    %9 = arith.cmpi eq, %arg2, %c0_i32_8 : i32
    %10 = arith.extui %9 : i1 to i32
    %c0_i32_9 = arith.constant 0 : i32
    %11 = arith.cmpi ne, %10, %c0_i32_9 : i32
    scf.if %11 {
      %c0_10 = arith.constant 0 : index
      %c0_11 = arith.constant 0 : index
      %12 = vector.load %arg7[%c0_10, %c0_11] : memref<16x32xf32, #tpu.memory_space<vmem>>, vector<16x32xf32>
      %c0_12 = arith.constant 0 : index
      %c0_13 = arith.constant 0 : index
      %13 = vector.load %arg5[%c0_12, %c0_13] : memref<16x32xbf16, #tpu.memory_space<vmem>>, vector<16x32xbf16>
      %14 = arith.extf %13 : vector<16x32xbf16> to vector<16x32xf32>
      %15 = arith.addf %12, %14 : vector<16x32xf32>
      %16 = arith.truncf %15 : vector<16x32xf32> to vector<16x32xbf16>
      %c0_14 = arith.constant 0 : index
      %c0_15 = arith.constant 0 : index
      %17 = vector.load %arg6[%c0_14, %c0_15] : memref<16x32xbf16, #tpu.memory_space<vmem>>, vector<16x32xbf16>
      tpu.vector_store %arg6[%c0_14, %c0_15], %16 {strides = array<i32>} : memref<16x32xbf16, #tpu.memory_space<vmem>>, vector<16x32xbf16>,
    } else {
    }
    return
  }
  func.func @transform_0(%arg0: i32, %arg1: i32, %arg2: i32) -> (i32, i32) {
    %c0_i32 = arith.constant 0 : i32
    return %arg0, %arg2 : i32, i32
  }
  func.func @transform_1(%arg0: i32, %arg1: i32, %arg2: i32) -> (i32, i32) {
    %c0_i32 = arith.constant 0 : i32
    return %arg2, %arg1 : i32, i32
  }
  func.func @transform_2(%arg0: i32, %arg1: i32, %arg2: i32) -> (i32, i32) {
    %c0_i32 = arith.constant 0 : i32
    return %arg0, %arg1 : i32, i32
  }
  func.func @transform_3(%arg0: i32, %arg1: i32, %arg2: i32) -> (i32, i32) {
    %c0_i32 = arith.constant 0 : i32
    return %arg0, %arg1 : i32, i32
  }
}

module attributes {stable_mosaic.version = 11 : i64} {
  func.func @_ln_matmul_kernel(%arg0: i32, %arg1: i32, %arg2: memref<16x32xbf16, #tpu.memory_space<vmem>>, %arg3: memref<1x32xf32, #tpu.memory_space<vmem>>, %arg4: memref<1x32xf32, #tpu.memory_space<vmem>>, %arg5: memref<32x64xbf16, #tpu.memory_space<vmem>>, %arg6: memref<16x64xf32, #tpu.memory_space<vmem>>) attributes {dimension_semantics = [#tpu.dimension_semantics<parallel>, #tpu.dimension_semantics<parallel>], iteration_bounds = array<i64: 1, 1>, scalar_prefetch = 0 : i64, scratch_operands = 0 : i64, tpu.core_type = #tpu.core_type<tc>, window_params = [{transform_indices = @transform_0, window_bounds = array<i64: 16, 32>}, {pipeline_mode = #tpu.pipeline_mode<synchronous>, transform_indices = @transform_1, window_bounds = array<i64: 1, 32>}, {pipeline_mode = #tpu.pipeline_mode<synchronous>, transform_indices = @transform_2, window_bounds = array<i64: 1, 32>}, {transform_indices = @transform_3, window_bounds = array<i64: 32, 64>}, {transform_indices = @transform_4, window_bounds = array<i64: 16, 64>}]} {
    %c0 = arith.constant 0 : index
    %c0_0 = arith.constant 0 : index
    %0 = vector.load %arg2[%c0, %c0_0] : memref<16x32xbf16, #tpu.memory_space<vmem>>, vector<16x32xbf16>
    %1 = arith.extf %0 : vector<16x32xbf16> to vector<16x32xf32>
    %cst = arith.constant dense<0.000000e+00> : vector<16xf32>
    %2 = vector.multi_reduction <add>, %1, %cst [1] : vector<16x32xf32> to vector<16xf32>
    %3 = vector.shape_cast %2 : vector<16xf32> to vector<16x1xf32>
    %cst_1 = arith.constant 3.200000e+01 : f32
    %4 = vector.broadcast %cst_1 : f32 to vector<16x1xf32>
    %5 = arith.divf %3, %4 : vector<16x1xf32>
    %6 = vector.broadcast %5 : vector<16x1xf32> to vector<16x32xf32>
    %7 = arith.subf %1, %6 : vector<16x32xf32>
    %8 = arith.mulf %7, %7 : vector<16x32xf32>
    %cst_2 = arith.constant dense<0.000000e+00> : vector<16xf32>
    %9 = vector.multi_reduction <add>, %8, %cst_2 [1] : vector<16x32xf32> to vector<16xf32>
    %10 = vector.shape_cast %9 : vector<16xf32> to vector<16x1xf32>
    %cst_3 = arith.constant 3.200000e+01 : f32
    %11 = vector.broadcast %cst_3 : f32 to vector<16x1xf32>
    %12 = arith.divf %10, %11 : vector<16x1xf32>
    %cst_4 = arith.constant 9.99999974E-6 : f32
    %13 = vector.broadcast %cst_4 : f32 to vector<16x1xf32>
    %14 = arith.addf %12, %13 : vector<16x1xf32>
    %15 = math.rsqrt %14 : vector<16x1xf32>
    %16 = vector.broadcast %15 : vector<16x1xf32> to vector<16x32xf32>
    %17 = arith.mulf %7, %16 : vector<16x32xf32>
    %c0_5 = arith.constant 0 : index
    %c0_6 = arith.constant 0 : index
    %18 = vector.load %arg3[%c0_5, %c0_6] : memref<1x32xf32, #tpu.memory_space<vmem>>, vector<1x32xf32>
    %19 = vector.broadcast %18 : vector<1x32xf32> to vector<16x32xf32>
    %20 = arith.mulf %17, %19 : vector<16x32xf32>
    %c0_7 = arith.constant 0 : index
    %c0_8 = arith.constant 0 : index
    %21 = vector.load %arg4[%c0_7, %c0_8] : memref<1x32xf32, #tpu.memory_space<vmem>>, vector<1x32xf32>
    %22 = vector.broadcast %21 : vector<1x32xf32> to vector<16x32xf32>
    %23 = arith.addf %20, %22 : vector<16x32xf32>
    %24 = arith.truncf %23 : vector<16x32xf32> to vector<16x32xbf16>
    %c0_9 = arith.constant 0 : index
    %c0_10 = arith.constant 0 : index
    %25 = vector.load %arg5[%c0_9, %c0_10] : memref<32x64xbf16, #tpu.memory_space<vmem>>, vector<32x64xbf16>
    %cst_11 = arith.constant dense<0.000000e+00> : vector<16x64xf32>
    %26 = tpu.matmul %24, %25, %cst_11 {dimension_numbers = #tpu.dot_dimension_numbers<[1], [0], [0], [1], [0, 0, 1, 1], [], []>} : vector<16x32xbf16>, vector<32x64xbf16>, vector<16x64xf32> -> vector<16x64xf32>
    %c0_12 = arith.constant 0 : index
    %c0_13 = arith.constant 0 : index
    %27 = vector.load %arg6[%c0_12, %c0_13] : memref<16x64xf32, #tpu.memory_space<vmem>>, vector<16x64xf32>
    tpu.vector_store %arg6[%c0_12, %c0_13], %26 {strides = array<i32>} : memref<16x64xf32, #tpu.memory_space<vmem>>, vector<16x64xf32>,
    return
  }
  func.func @transform_0(%arg0: i32, %arg1: i32) -> (i32, i32) {
    %c0_i32 = arith.constant 0 : i32
    %c0_i32_0 = arith.constant 0 : i32
    return %arg0, %c0_i32 : i32, i32
  }
  func.func @transform_1(%arg0: i32, %arg1: i32) -> (i32, i32) {
    %c0_i32 = arith.constant 0 : i32
    %c0_i32_0 = arith.constant 0 : i32
    %c0_i32_1 = arith.constant 0 : i32
    return %c0_i32, %c0_i32_0 : i32, i32
  }
  func.func @transform_2(%arg0: i32, %arg1: i32) -> (i32, i32) {
    %c0_i32 = arith.constant 0 : i32
    %c0_i32_0 = arith.constant 0 : i32
    %c0_i32_1 = arith.constant 0 : i32
    return %c0_i32, %c0_i32_0 : i32, i32
  }
  func.func @transform_3(%arg0: i32, %arg1: i32) -> (i32, i32) {
    %c0_i32 = arith.constant 0 : i32
    %c0_i32_0 = arith.constant 0 : i32
    return %c0_i32, %arg1 : i32, i32
  }
  func.func @transform_4(%arg0: i32, %arg1: i32) -> (i32, i32) {
    %c0_i32 = arith.constant 0 : i32
    return %arg0, %arg1 : i32, i32
  }
}

</mosaic_0001>

<bundles_post_ra>
// kernel: neg.4
= control target key start
LH: loop header
LB: loop body
LE: loop exit
PB: predicated region body
PF: predicated region fallthrough
CT: control target
= control target key end

     0   :  { %s72_s0 = inlined_call_operand.vmem [shape: f32[2,8,16], index: 0, kind: input, shape index: {}]   ;;  %s73_s1 = inlined_call_operand.vmem [shape: f32[2,8,16], index: 1, kind: output, shape index: {}]  }
   0x1   :  { %v2_v0 = vld [vmem:[%s72_s0] sm:$0xff]  ;;  %v32_v1 = vld [vmem:[%s72_s0 + $0x10] sm:$0xff]  ;;  %v34_v2 = vld [vmem:[%s72_s0 + $0x8] sm:$0xff] }
   0x2   :  { %v5_v3 = vxor.u32 2147483648, %v2_v0  ;;  %v12_v4 = vxor.u32 2147483648, %v32_v1  ;;  %v20_v5 = vxor.u32 2147483648, %v34_v2  ;;  %v36_v6 = vld [vmem:[%s72_s0 + $0x18] sm:$0xff] }
   0x3   :  { %v28_v7 = vxor.u32 2147483648, %v36_v6 }
   0x4   :  { %7 = vst [vmem:[%s73_s1] sm:$0xff] %v5_v3  ;;  %33 = vst [vmem:[%s73_s1 + $0x10] sm:$0xff] %v12_v4 }
   0x5   :  { %35 = vst [vmem:[%s73_s1 + $0x8] sm:$0xff] %v20_v5  ;;  %37 = vst [vmem:[%s73_s1 + $0x18] sm:$0xff] %v28_v7 }

// kernel: _lambda_.11
= control target key start
LH: loop header
LB: loop body
LE: loop exit
PB: predicated region body
PF: predicated region fallthrough
CT: control target
= control target key end

     0   :  { %vm22_vm0 = vcmask 261120   ;;  %v176_v15 = vmov 0.0   ;;  %vm177_vm1 = vmmov 0   ;;  %vm137_vm2 = vcmask 519168   ;;  %s229_s0 = inlined_call_operand.vmem [shape: bf16[16,32], index: 0, kind: input, shape index: {}]   ;;  %s230_s3 = inlined_call_operand.vmem [shape: bf16[32,64], index: 3, kind: input, shape index: {}]   ;;  %s231_s1 = inlined_call_operand.vmem [shape: f32[1,32], index: 1, kind: input, shape index: {}]   ;;  %s232_s2 = inlined_call_operand.vmem [shape: f32[1,32], index: 2, kind: input, shape index: {}]   ;;  %s233_s4 = inlined_call_operand.vmem [shape: bf16[16,64], index: 4, kind: output, shape index: {}]  }
   0x1   :  { %v154_v0 = vld [vmem:[%s229_s0] sm:$0xff]   ;;  %160 = vmatprep.subr.bf16.mxu0 %v176_v15  ;;  %v170_v16 = vld [vmem:[%s230_s3 + $0x8] sm:$0xff]   ;;  %164 = vmatprep.mubr.msk.bf16.mxu0 %vm177_vm1, %v176_v15 }
   0x2   :  { %v155_v1 = vunpack.c.l.bf16 %v154_v0  ;;  %v156_v2 = vunpack.c.h.bf16 %v154_v0  ;;  %161 = vmatpush3.bf16.msra.mxu0 %v170_v16  ;;  %v171_v17 = vld [vmem:[%s230_s3] sm:$0xff]  }
   0x3   :  { %162 = vmatprep.subr.bf16.mxu0 %v176_v15  ;;  %v144_v26 = vld [vmem:[%s231_s1] ss:$0 sm:$0xff] }
   0x4   :  { %v23_v3 = vsel %vm22_vm0, %v155_v1, 0.0  ;;  %v26_v4 = vsel %vm22_vm0, %v156_v2, 0.0  ;;  %v145_v30 = vld [vmem:[%s232_s2] ss:$0 sm:$0xff] }
   0x5   :  { %24 = vadd.xlane.f32.xlu0 %v23_v3 }
   0x6   :  { %163 = vmatpush3.bf16.msra.mxu0 %v171_v17 }
   0x9   :  { %27 = vadd.xlane.f32.xlu0 %v26_v4 }
  0x8e   :  { %v25_v5 = vpop.xlane.xlu0 %24 }
  0x8f   :  { %v30_v6 = vmul.f32 0.03125, %v25_v5 }
  0x91   :  { %v32_v7 = vsub.f32 %v155_v1, %v30_v6 }
  0x92   :  { %v28_v8 = vpop.xlane.xlu0 %27 }
  0x93   :  { %v31_v9 = vmul.f32 0.03125, %v28_v8  ;;  %v34_v10 = vmul.f32 %v32_v7, %v32_v7 }
  0x95   :  { %v33_v11 = vsub.f32 %v156_v2, %v31_v9  ;;  %v36_v12 = vsel %vm22_vm0, %v34_v10, 0.0 }
  0x96   :  { %37 = vadd.xlane.f32.xlu1 %v36_v12 }
  0x97   :  { %v35_v13 = vmul.f32 %v33_v11, %v33_v11 }
  0x99   :  { %v39_v14 = vsel %vm22_vm0, %v35_v13, 0.0 }
  0x9a   :  { %40 = vadd.xlane.f32.xlu1 %v39_v14 }
 0x11f   :  { %v38_v18 = vpop.xlane.xlu1 %37 }
 0x120   :  { %v42_v19 = vmul.f32 0.03125, %v38_v18 }
 0x122   :  { %v44_v20 = vadd.f32 1e-05, %v42_v19 }
 0x123   :  { %v41_v21 = vpop.xlane.xlu1 %40 }
 0x124   :  { %172 = vrsqrt.f32 %v44_v20  ;;  %v43_v22 = vmul.f32 0.03125, %v41_v21 }
 0x126   :  { %v45_v23 = vadd.f32 1e-05, %v43_v22 }
 0x128   :  { %174 = vrsqrt.f32 %v45_v23 }
 0x131   :  { %v173_v24 = vpop.eup %172 }
 0x132   :  { %v48_v25 = vmul.f32 %v173_v24, %v32_v7 }
 0x134   :  { %v57_v29 = vmul.f32 %v144_v26, %v48_v25 }
 0x135   :  { %v175_v27 = vpop.eup %174 }
 0x136   :  { %v49_v28 = vmul.f32 %v175_v27, %v33_v11  ;;  %v66_v32 = vadd.f32 %v145_v30, %v57_v29 }
 0x138   :  { %v58_v31 = vmul.f32 %v144_v26, %v49_v28 }
 0x13a   :  { %v67_v33 = vadd.f32 %v145_v30, %v58_v31 }
 0x13c   :  { %v68_v34 = vpack.c.bf16 %v67_v33, %v66_v32 }
 0x13e   :  { %165 = vmatmul.mubr.msk.bf16.vlgmr.msra.gmra.mxu0 %vm22_vm0, %v68_v34 }
 0x1fe   :  { %v122_v35 = vpop.f32.mrf.mxu0 }
 0x1ff   :  { %v151_v36 = vpack.c.bf16 %v122_v35, %v122_v35 }
 0x200   :  { %v166_v37 = vpop.f32.mrf.mxu0 }
 0x201   :  { %138 = vst.msk [vmem:[%s233_s4] sm:$0xf] %vm137_vm2, %v151_v36 }
 0x202   :  { %v125_v38 = vpop.f32.mrf.mxu0 }
 0x203   :  { %v152_v39 = vpack.c.bf16 %v125_v38, %v125_v38 }
 0x204   :  { %v167_v40 = vpop.f32.mrf.mxu0 }
 0x205   :  { %139 = vst.msk [vmem:[%s233_s4 + $0x4] sm:$0xf] %vm137_vm2, %v152_v39 }

// kernel: _lambda_.15
= control target key start
LH: loop header
LB: loop body
LE: loop exit
PB: predicated region body
PF: predicated region fallthrough
CT: control target
= control target key end

     0   :  { %vm22_vm0 = vcmask 261120   ;;  %v190_v0 = vmov 0.0   ;;  %vm191_vm1 = vmmov 0   ;;  %vm66_vm2 = vcmask 523264   ;;  %s248_s1 = inlined_call_operand.vmem [shape: bf16[64,32], index: 1, kind: input, shape index: {}]   ;;  %s249_s0 = inlined_call_operand.vmem [shape: bf16[16,64], index: 0, kind: input, shape index: {}]   ;;  %s250_s3 = inlined_call_operand.vmem [shape: bf16[16,32], index: 3, kind: input, shape index: {}]   ;;  %s251_s2 = inlined_call_operand.vmem [shape: f32[1,32], index: 2, kind: input, shape index: {}]   ;;  %s252_s4 = inlined_call_operand.vmem [shape: bf16[16,32], index: 4, kind: output, shape index: {}]  }
   0x1   :  { %171 = vmatprep.subr.bf16.mxu0 %v190_v0  ;;  %v185_v1 = vld [vmem:[%s248_s1 + $0x18] sm:$0xff]   ;;  %179 = vmatprep.mubr.msk.bf16.mxu0 %vm191_vm1, %v190_v0  ;;  %23 = vst.msk [vmem:[#allocation2] sm:$0xff] %vm22_vm0, %v190_v0  ;;  %24 = vst.msk [vmem:[#allocation2 + $0x8] sm:$0xff] %vm22_vm0, %v190_v0  ;;  %v186_v2 = vld [vmem:[%s248_s1 + $0x10] sm:$0xff]   ;;  %vm144_vm3 = vcmask 257024  }
   0x2   :  { %172 = vmatpush3.bf16.msra.mxu0 %v185_v1  ;;  %v187_v3 = vld [vmem:[%s248_s1 + $0x8] sm:$0xff]   ;;  %v188_v4 = vld [vmem:[%s248_s1] sm:$0xff]  }
   0x3   :  { %173 = vmatprep.subr.bf16.mxu0 %v190_v0  ;;  %v189_v5 = vld [vmem:[%s249_s0] sm:$0xff]  }
   0x4   :  { %v163_v13 = vld [vmem:[%s250_s3] sm:$0xff]  }
   0x5   :  { %v157_v15 = vld [vmem:[%s251_s2] ss:$0 sm:$0xff]  ;;  %v164_v16 = vunpack.c.l.bf16 %v163_v13  ;;  %v165_v20 = vunpack.c.h.bf16 %v163_v13 }
   0x6   :  { %174 = vmatpush3.bf16.msra.mxu0 %v186_v2 }
   0x7   :  { %175 = vmatprep.subr.bf16.mxu0 %v190_v0 }
   0x8   :  { %v25_v6 = vld [vmem:[#allocation2] sm:$0xff]  ;;  %v26_v10 = vld [vmem:[#allocation2 + $0x8] sm:$0xff] }
   0xa   :  { %176 = vmatpush3.bf16.msra.mxu0 %v187_v3 }
   0xb   :  { %177 = vmatprep.subr.bf16.mxu0 %v190_v0 }
   0xe   :  { %178 = vmatpush3.bf16.msra.mxu0 %v188_v4 }
  0x11   :  { %180 = vmatmul.mubr.msk.bf16.vlgmr.msra.gmra.mxu0 %vm66_vm2, %v189_v5 }
  0xd1   :  { %v104_v7 = vpop.f32.mrf.mxu0 }
  0xd2   :  { %v111_v8 = vadd.f32 %v104_v7, %v25_v6 }
  0xd3   :  { %v181_v9 = vpop.f32.mrf.mxu0 }
  0xd4   :  { %114 = vst.msk [vmem:[#allocation2] sm:$0xff] %vm22_vm0, %v111_v8 }
  0xd5   :  { %v107_v11 = vpop.f32.mrf.mxu0 }
  0xd6   :  { %v112_v12 = vadd.f32 %v107_v11, %v26_v10 }
  0xd7   :  { %v182_v14 = vpop.f32.mrf.mxu0 }
  0xd8   :  { %115 = vst.msk [vmem:[#allocation2 + $0x8] sm:$0xff] %vm22_vm0, %v112_v12 }
  0xdb   :  { %v119_v17 = vld [vmem:[#allocation2] sm:$0xff] }
  0xdc   :  { %v128_v18 = vadd.f32 %v157_v15, %v119_v17 }
  0xde   :  { %v134_v19 = vadd.f32 %v164_v16, %v128_v18 }
  0xdf   :  { %v120_v21 = vld [vmem:[#allocation2 + $0x8] sm:$0xff] }
  0xe0   :  { %v160_v22 = vpack.c.bf16 %v134_v19, %v134_v19  ;;  %v129_v23 = vadd.f32 %v157_v15, %v120_v21 }
  0xe2   :  { %145 = vst.msk [vmem:[%s252_s4] sm:$0xf] %vm144_vm3, %v160_v22  ;;  %v135_v24 = vadd.f32 %v165_v20, %v129_v23 }
  0xe4   :  { %v161_v25 = vpack.c.bf16 %v135_v24, %v135_v24 }
  0xe6   :  { %146 = vst.msk [vmem:[%s252_s4 + $0x4] sm:$0xf] %vm144_vm3, %v161_v25 }

// kernel: _lambda_.13
= control target key start
LH: loop header
LB: loop body
LE: loop exit
PB: predicated region body
PF: predicated region fallthrough
CT: control target
= control target key end

     0   :  { %vm19_vm0 = vcmask 261120   ;;  %v150_v0 = vmov 0.0   ;;  %vm151_vm1 = vmmov 0   ;;  %vm115_vm2 = vcmask 257024   ;;  %s195_s1 = inlined_call_operand.vmem [shape: bf16[32,32], index: 1, kind: input, shape index: {}]   ;;  %s196_s0 = inlined_call_operand.vmem [shape: bf16[16,32], index: 0, kind: input, shape index: {}]   ;;  %s197_s2 = inlined_call_operand.vmem [shape: bf16[16,32], index: 2, kind: input, shape index: {}]   ;;  %s198_s3 = inlined_call_operand.vmem [shape: bf16[16,32], index: 3, kind: output, shape index: {}]  }
   0x1   :  { %137 = vmatprep.subr.bf16.mxu0 %v150_v0  ;;  %v147_v1 = vld [vmem:[%s195_s1 + $0x8] sm:$0xff]   ;;  %141 = vmatprep.mubr.msk.bf16.mxu0 %vm151_vm1, %v150_v0  ;;  %20 = vst.msk [vmem:[#allocation2] sm:$0xff] %vm19_vm0, %v150_v0  ;;  %21 = vst.msk [vmem:[#allocation2 + $0x8] sm:$0xff] %vm19_vm0, %v150_v0  ;;  %v148_v2 = vld [vmem:[%s195_s1] sm:$0xff]  }
   0x2   :  { %138 = vmatpush3.bf16.msra.mxu0 %v147_v1  ;;  %v149_v3 = vld [vmem:[%s196_s0] sm:$0xff]  }
   0x3   :  { %139 = vmatprep.subr.bf16.mxu0 %v150_v0  ;;  %v131_v9 = vld [vmem:[%s197_s2] sm:$0xff]  }
   0x4   :  { %v132_v13 = vunpack.c.l.bf16 %v131_v9  ;;  %v133_v16 = vunpack.c.h.bf16 %v131_v9 }
   0x6   :  { %140 = vmatpush3.bf16.msra.mxu0 %v148_v2 }
   0x8   :  { %v22_v4 = vld [vmem:[#allocation2] sm:$0xff]  ;;  %v23_v8 = vld [vmem:[#allocation2 + $0x8] sm:$0xff] }
   0x9   :  { %142 = vmatmul.mubr.msk.bf16.vlgmr.msra.gmra.mxu0 %vm19_vm0, %v149_v3 }
  0xc9   :  { %v85_v5 = vpop.f32.mrf.mxu0 }
  0xca   :  { %v92_v6 = vadd.f32 %v85_v5, %v22_v4 }
  0xcb   :  { %v143_v7 = vpop.f32.mrf.mxu0 }
  0xcc   :  { %94 = vst.msk [vmem:[#allocation2] sm:$0xff] %vm19_vm0, %v92_v6 }
  0xcd   :  { %v88_v10 = vpop.f32.mrf.mxu0 }
  0xce   :  { %v93_v11 = vadd.f32 %v88_v10, %v23_v8 }
  0xcf   :  { %v144_v12 = vpop.f32.mrf.mxu0 }
  0xd0   :  { %95 = vst.msk [vmem:[#allocation2 + $0x8] sm:$0xff] %vm19_vm0, %v93_v11 }
  0xd3   :  { %v99_v14 = vld [vmem:[#allocation2] sm:$0xff] }
  0xd4   :  { %v105_v15 = vadd.f32 %v132_v13, %v99_v14 }
  0xd6   :  { %v128_v17 = vpack.c.bf16 %v105_v15, %v105_v15 }
  0xd7   :  { %v100_v18 = vld [vmem:[#allocation2 + $0x8] sm:$0xff] }
  0xd8   :  { %116 = vst.msk [vmem:[%s198_s3] sm:$0xf] %vm115_vm2, %v128_v17  ;;  %v106_v19 = vadd.f32 %v133_v16, %v100_v18 }
  0xda   :  { %v129_v20 = vpack.c.bf16 %v106_v19, %v106_v19 }
  0xdc   :  { %117 = vst.msk [vmem:[%s198_s3 + $0x4] sm:$0xf] %vm115_vm2, %v129_v20 }

// kernel: _lambda_.14
= control target key start
LH: loop header
LB: loop body
LE: loop exit
PB: predicated region body
PF: predicated region fallthrough
CT: control target
= control target key end

     0   :  { %vm28_vm0 = vcmask 261120   ;;  %v296_v5 = vmov 0.0   ;;  %vm297_vm1 = vmmov 0   ;;  %vm231_vm2 = vcmask 519168   ;;  %s369_s0 = inlined_call_operand.vmem [shape: bf16[16,32], index: 0, kind: input, shape index: {}]   ;;  %s370_s5 = inlined_call_operand.vmem [shape: bf16[32,64], index: 5, kind: input, shape index: {}]   ;;  %s371_s3 = inlined_call_operand.vmem [shape: bf16[32,64], index: 3, kind: input, shape index: {}]   ;;  %s372_s1 = inlined_call_operand.vmem [shape: f32[1,32], index: 1, kind: input, shape index: {}]   ;;  %s373_s2 = inlined_call_operand.vmem [shape: f32[1,32], index: 2, kind: input, shape index: {}]   ;;  %s374_s4 = inlined_call_operand.vmem [shape: f32[1,64], index: 4, kind: input, shape index: {}]   ;;  %s375_s6 = inlined_call_operand.vmem [shape: bf16[16,64], index: 6, kind: output, shape index: {}]  }
   0x1   :  { %v24_v0 = vld [vmem:[%s369_s0] sm:$0xff]   ;;  %268 = vmatprep.subr.bf16.mxu1 %v296_v5  ;;  %v279_v6 = vld [vmem:[%s370_s5 + $0x8] sm:$0xff]   ;;  %272 = vmatprep.mubr.msk.bf16.mxu1 %vm297_vm1, %v296_v5 }
   0x2   :  { %v26_v1 = vunpack.c.l.bf16 %v24_v0  ;;  %v27_v2 = vunpack.c.h.bf16 %v24_v0  ;;  %260 = vmatprep.subr.bf16.mxu0 %v296_v5  ;;  %264 = vmatprep.mubr.msk.bf16.mxu0 %vm297_vm1, %v296_v5  ;;  %v280_v7 = vld [vmem:[%s370_s5] sm:$0xff]   ;;  %v281_v18 = vld [vmem:[%s371_s3 + $0x8] sm:$0xff]  }
   0x3   :  { %269 = vmatpush3.bf16.msra.mxu1 %v279_v6  ;;  %261 = vmatpush3.bf16.msra.mxu0 %v281_v18  ;;  %v282_v19 = vld [vmem:[%s371_s3] sm:$0xff]  }
   0x4   :  { %v29_v3 = vsel %vm28_vm0, %v26_v1, 0.0  ;;  %v32_v4 = vsel %vm28_vm0, %v27_v2, 0.0  ;;  %270 = vmatprep.subr.bf16.mxu1 %v296_v5  ;;  %262 = vmatprep.subr.bf16.mxu0 %v296_v5  ;;  %v238_v32 = vld [vmem:[%s372_s1] ss:$0 sm:$0xff] }
   0x5   :  { %30 = vadd.xlane.f32.xlu0 %v29_v3  ;;  %v239_v36 = vld [vmem:[%s373_s2] ss:$0 sm:$0xff] }
   0x6   :  { %v240_v47 = vld [vmem:[%s374_s4] ss:$0 sm:$0xff] }
   0x7   :  { %271 = vmatpush3.bf16.msra.mxu1 %v280_v7  ;;  %263 = vmatpush3.bf16.msra.mxu0 %v282_v19 }
   0x9   :  { %33 = vadd.xlane.f32.xlu0 %v32_v4 }
   0xa   :  { %273 = vmatmul.mubr.msk.bf16.vlgmr.msra.gmra.mxu1 %vm28_vm0, %v24_v0 }
  0x8e   :  { %v31_v8 = vpop.xlane.xlu0 %30 }
  0x8f   :  { %v36_v9 = vmul.f32 0.03125, %v31_v8 }
  0x91   :  { %v38_v10 = vsub.f32 %v26_v1, %v36_v9 }
  0x92   :  { %v34_v11 = vpop.xlane.xlu0 %33 }
  0x93   :  { %v37_v12 = vmul.f32 0.03125, %v34_v11  ;;  %v40_v13 = vmul.f32 %v38_v10, %v38_v10 }
  0x95   :  { %v39_v14 = vsub.f32 %v27_v2, %v37_v12  ;;  %v42_v15 = vsel %vm28_vm0, %v40_v13, 0.0 }
  0x96   :  { %43 = vadd.xlane.f32.xlu1 %v42_v15 }
  0x97   :  { %v41_v16 = vmul.f32 %v39_v14, %v39_v14 }
  0x99   :  { %v45_v17 = vsel %vm28_vm0, %v41_v16, 0.0 }
  0x9a   :  { %46 = vadd.xlane.f32.xlu1 %v45_v17 }
  0xca   :  { %v200_v20 = vpop.f32.mrf.mxu1 }
  0xcb   :  { %v248_v41 = vmul.f32 -1.442695, %v200_v20 }
  0xcc   :  { %v274_v21 = vpop.f32.mrf.mxu1 }
  0xce   :  { %v203_v22 = vpop.f32.mrf.mxu1 }
  0xcf   :  { %v249_v42 = vmul.f32 -1.442695, %v203_v22 }
  0xd0   :  { %v275_v23 = vpop.f32.mrf.mxu1 }
 0x11f   :  { %v44_v24 = vpop.xlane.xlu1 %43 }
 0x120   :  { %v48_v25 = vmul.f32 0.03125, %v44_v24 }
 0x122   :  { %v50_v26 = vadd.f32 1e-05, %v48_v25 }
 0x123   :  { %v47_v27 = vpop.xlane.xlu1 %46 }
 0x124   :  { %284 = vrsqrt.f32 %v50_v26  ;;  %v49_v28 = vmul.f32 0.03125, %v47_v27 }
 0x126   :  { %v51_v29 = vadd.f32 1e-05, %v49_v28 }
 0x128   :  { %286 = vrsqrt.f32 %v51_v29 }
 0x129   :  { %288 = vpow2.f32 %v248_v41 }
 0x12a   :  { %290 = vpow2.f32 %v249_v42 }
 0x131   :  { %v285_v30 = vpop.eup %284 }
 0x132   :  { %v54_v31 = vmul.f32 %v285_v30, %v38_v10 }
 0x134   :  { %v63_v35 = vmul.f32 %v238_v32, %v54_v31 }
 0x135   :  { %v287_v33 = vpop.eup %286 }
 0x136   :  { %v55_v34 = vmul.f32 %v287_v33, %v39_v14  ;;  %v72_v38 = vadd.f32 %v239_v36, %v63_v35  ;;  %v289_v43 = vpop.eup %288 }
 0x137   :  { %v215_v44 = vadd.f32 1.0, %v289_v43  ;;  %v291_v45 = vpop.eup %290 }
 0x138   :  { %v64_v37 = vmul.f32 %v238_v32, %v55_v34  ;;  %v216_v46 = vadd.f32 1.0, %v291_v45 }
 0x139   :  { %292 = vrcp.f32 %v215_v44 }
 0x13a   :  { %v73_v39 = vadd.f32 %v239_v36, %v64_v37  ;;  %294 = vrcp.f32 %v216_v46 }
 0x13c   :  { %v74_v40 = vpack.c.bf16 %v73_v39, %v72_v38 }
 0x13e   :  { %265 = vmatmul.mubr.msk.bf16.vlgmr.msra.gmra.mxu0 %vm28_vm0, %v74_v40 }
 0x146   :  { %v293_v50 = vpop.eup %292 }
 0x147   :  { %v295_v59 = vpop.eup %294 }
 0x1fe   :  { %v135_v48 = vpop.f32.mrf.mxu0 }
 0x1ff   :  { %v136_v49 = vadd.f32 %v240_v47, %v135_v48 }
 0x200   :  { %v266_v51 = vpop.f32.mrf.mxu0 }
 0x201   :  { %v207_v52 = vmul.f32 %v200_v20, %v136_v49 }
 0x202   :  { %v138_v53 = vpop.f32.mrf.mxu0 }
 0x203   :  { %v221_v54 = vmul.f32 %v293_v50, %v207_v52  ;;  %v139_v55 = vadd.f32 %v240_v47, %v138_v53 }
 0x204   :  { %v267_v56 = vpop.f32.mrf.mxu0 }
 0x205   :  { %v252_v57 = vpack.c.bf16 %v221_v54, %v221_v54  ;;  %v208_v58 = vmul.f32 %v203_v22, %v139_v55 }
 0x207   :  { %232 = vst.msk [vmem:[%s375_s6] sm:$0xf] %vm231_vm2, %v252_v57  ;;  %v222_v60 = vmul.f32 %v295_v59, %v208_v58 }
 0x209   :  { %v253_v61 = vpack.c.bf16 %v222_v60, %v222_v60 }
 0x20b   :  { %233 = vst.msk [vmem:[%s375_s6 + $0x4] sm:$0xf] %vm231_vm2, %v253_v61 }

// kernel: _lambda_.12
= control target key start
LH: loop header
LB: loop body
LE: loop exit
PB: predicated region body
PF: predicated region fallthrough
CT: control target
= control target key end

     0   :  { %s974_s12 = smov 0   ;;  %s976_s13 = smov 0   ;;  %s1093_s0 = inlined_call_operand.vmem [shape: bf16[2,4,8,8], index: 0, kind: input, shape index: {}]   ;;  %s1094_s1 = inlined_call_operand.vmem [shape: bf16[2,2,8,8], index: 1, kind: input, shape index: {}]   ;;  %s1095_s2 = inlined_call_operand.vmem [shape: bf16[2,2,8,8], index: 2, kind: input, shape index: {}]   ;;  %s1096_s3 = inlined_call_operand.vmem [shape: bf16[2,4,8,8], index: 3, kind: output, shape index: {}]  }
   0x1   :  { %s978_s14 = smov 0   ;;  %s980_s15 = smov 0  }
   0x2   :  { %s982_s16 = smov 0  }
   0x3 LB: > { %s35_s17 = sadd.s32 1, %s940_s14  ;;  %s39_s18 = sadd.s32 1, %s944_s15  ;;  %s948_s16 = sphi %s982_s16, %s13_s16   ;;  %s944_s15 = sphi %s980_s15, %s1100_s15   ;;  %s940_s14 = sphi %s978_s14, %s1099_s14   ;;  %s936_s13 = sphi %s976_s13, %s1098_s13   ;;  %s932_s12 = sphi %s974_s12, %s1097_s12  }
   0x4   : > { %p37_p0 = scmp.ge.s32.totalorder %s35_s17, 2  ;;  %p801_p1 = scmp.ge.s32.totalorder %s948_s16, 1 }
   0x5   : > { %p219_p2 = scmp.lt.s32.totalorder %s948_s16, 5 }
   0x6   : > { %s1102_s17 = smov (%p37_p0, %s35_s17), 0  ;;  %s1104_s18 = smov (!%p37_p0, %s39_s18), %s944_s15 }
   0x7   : > { %p220_p3 = pnand %p801_p1, %p219_p2  ;;  %p41_p4 = scmp.ge.s32.totalorder %s1104_s18, 2 }
   0x8   : > { %p280_p5 = scmp.lt.s32.totalorder (!%p220_p3), %s936_s13, 1  ;;  %p294_p6 = scmp.lt.s32.totalorder (!%p220_p3), %s932_s12, 1 }
   0x9   : > { %s1106_s18 = smov (%p41_p4, %s1104_s18), 0  ;;  %223 = sbr.rel (%p220_p3) target bundleno = 1288 (0x508), region = 32 }
   0xa   : > { %s802_s19 = sshll.u32 (!%p220_p3), %s932_s12, 1 }
   0xb   : > { %p282_p7 = scmp.lt.s32.totalorder (!%p220_p3), %s802_s19, 3 }
   0xe   : > { %vm339_vm0 = vcmask 64512   ;;  %v950_v0 = vmov 0.0   ;;  %vm951_vm1 = vmmov 0   ;;  %s1108_s13 = smov (!%p280_p5, %s936_s13), 1  ;;  %s1110_s12 = smov (!%p294_p6, %s932_s12), 1  ;;  %vm334_vm2 = vcmask 7168  }
   0xf   : > { %828 = vmatprep.subr.bf16.mxu0 %v950_v0  ;;  %340 = vst.msk [vmem:[#allocation4] sm:$0xff] %vm339_vm0, %v950_v0  ;;  %341 = vst.msk [vmem:[#allocation4 + $0x8] sm:$0xff] %vm339_vm0, %v950_v0  ;;  %830 = vmatprep.mubr.msk.bf16.mxu0 %vm951_vm1, %v950_v0  ;;  %s805_s20 = sshll.u32 %s1108_s13, 1  ;;  %s803_s26 = sshll.u32 %s1108_s13, 2  ;;  %v952_v4 = vmov -1e+30   ;;  %v349_v5 = vlaneseq }
  0x10   : > { %834 = vmatprep.subr.bf16.mxu1 %v950_v0  ;;  %836 = vmatprep.mubr.msk.bf16.mxu1 %vm951_vm1, %v950_v0  ;;  %s1019_s21 = sadd.s32 %s805_s20, %s1110_s12  ;;  %s1112_s19 = smov (!%p282_p7, %s802_s19), 3  ;;  %335 = vst.msk [vmem:[#allocation2] sm:$0xff] %vm334_vm2, %v952_v4  ;;  %336 = vst.msk [vmem:[#allocation2 + $0x8] sm:$0xff] %vm334_vm2, %v952_v4  ;;  %v953_v15 = vmov 0   ;;  %vm443_vm4 = vcmask 1043456   ;;  %vm630_vm5 = vcmask 60416  }
  0x11   : > { %s806_s22 = sshll.u32 %s1019_s21, 2  ;;  %s1028_s27 = sadd.s32 %s803_s26, %s1112_s19  ;;  %337 = vst.msk [vmem:[#allocation3] sm:$0xff] %vm334_vm2, %v950_v0  ;;  %338 = vst.msk [vmem:[#allocation3 + $0x8] sm:$0xff] %vm334_vm2, %v950_v0  ;;  %v350_v6 = vshrl.u32 %v349_v5, 7  ;;  %v354_v7 = vand.u32 127, %v349_v5  ;;  %896 = vset.pattern.permute.xlu0 %v953_v15  ;;  %897 = vset.pattern.permute.xlu1 %v953_v15 }
  0x12   : > { %s302_s25 = scalar_lea.vmem %s1094_s1, %s806_s22  ;;  %s804_s28 = sshll.u32 %s1028_s27, 2 }
  0x13   : > { %v347_v1 = vld [vmem:[%s302_s25] sm:$0xf]  ;;  %s1037_s4 = scalar_lea.vmem %s1093_s0, %s804_s28  ;;  %vm357_vm3 = vcmp.le.s32.totalorder %v354_v7, %v350_v6  ;;  %s313_s7 = scalar_lea.vmem %s1095_s2, %s806_s22 }
  0x14   : > { %v364_v2 = vsel %vm339_vm0, %v347_v1, 0  ;;  %v358_v3 = vld [vmem:[%s1037_s4] sm:$0xf]  ;;  %v814_v27 = vld [vmem:[%s1037_s4 + $0x4] sm:$0xf]  ;;  %s325_s10 = scalar_lea.vmem %s1096_s3, %s804_s28 }
  0x15   : > { %829 = vmatpush3.bf16.xpose.msra.mxu0 %v364_v2  ;;  %v348_v20 = vld [vmem:[%s313_s7] sm:$0xf] }
  0x16   : > { %846 = vmatprep.subr.bf16.mxu0 %v950_v0  ;;  %v445_v21 = vsel %vm443_vm4, %v348_v20, 0  ;;  %v432_v58 = vld [vmem:[#allocation4] sm:$0xff] }
  0x17   : > { %v408_v16 = vld [vmem:[#allocation2] sm:$0xff]  ;;  %835 = vmatpush3.bf16.msra.mxu1 %v445_v21  ;;  %v538_v39 = vld [vmem:[#allocation2 + $0x8] sm:$0xff] }
  0x18   : > { %840 = vmatprep.subr.bf16.mxu1 %v950_v0  ;;  %v424_v54 = vld [vmem:[#allocation3] sm:$0xff] }
  0x1c   : > { %831 = vmatmul.mubr.msk.bf16.vlgmr.msra.gmra.mxu0 %vm339_vm0, %v358_v3 }
  0x1d   : > { %848 = vmatprep.mubr.msk.bf16.mxu0 %vm951_vm1, %v950_v0  ;;  %847 = vmatpush3.bf16.msra.mxu0 %v445_v21 }
  0xdc   : > { %v400_v8 = vpop.f32.mrf.mxu0 }
  0xdd   : > { %v406_v9 = vmul.f32 0.35355338, %v400_v8 }
  0xde   : > { %v832_v10 = vpop.f32.mrf.mxu0 }
  0xdf   : > { %v407_v11 = vsel %vm357_vm3, %v406_v9, -1e+30 }
  0xe0   : > { %v403_v12 = vpop.f32.mrf.mxu0  ;;  %v409_v13 = vsel %vm339_vm0, %v407_v11, -inf }
  0xe1   : > { %410 = vmax.xlane.f32.xlu0 %v409_v13 }
  0xe2   : > { %v833_v14 = vpop.f32.mrf.mxu0 }
 0x16a   : > { %v411_v17 = vpop.xlane.xlu0 %410 }
 0x16b   : > { %v412_v18 = vmax.f32 %v408_v16, %v411_v17 }
 0x16d   : > { %v413_v19 = vsub.f32 %v408_v16, %v412_v18  ;;  %489 = vst.msk [vmem:[#allocation2] sm:$0xff] %vm334_vm2, %v412_v18  ;;  %418 = vperm.xlu0 %896, %v412_v18  }
 0x16f   : > { %v414_v42 = vmul.f32 1.442695, %v413_v19 }
 0x1e8   : > { %v419_v22 = vpop.permute.xlu0 %418 }
 0x1e9   : > { %v421_v23 = vsub.f32 %v407_v11, %v419_v22  ;;  %v563_v11 = vld [vmem:[#allocation4 + $0x8] sm:$0xff] }
 0x1eb   : > { %v422_v24 = vmul.f32 1.442695, %v421_v23 }
 0x1ed   : > { %898 = vpow2.f32 %v422_v24 }
 0x1ee   : > { %900 = vpow2.f32 %v414_v42 }
 0x1fa   : > { %v899_v25 = vpop.eup %898 }
 0x1fb   : > { %v439_v26 = vpack.c.bf16 %v899_v25, %v899_v25  ;;  %v426_v44 = vsel %vm339_vm0, %v899_v25, 0.0  ;;  %v901_v46 = vpop.eup %900 }
 0x1fc   : > { %v425_v55 = vmul.f32 %v901_v46, %v424_v54 }
 0x1fd   : > { %837 = vmatmul.mubr.msk.bf16.vlgmr.msra.gmra.mxu1 %vm339_vm0, %v439_v26 }
 0x1fe   : > { %841 = vmatpush3.bf16.xpose.msra.mxu1 %v364_v2  ;;  %842 = vmatprep.mubr.msk.bf16.mxu1 %vm951_vm1, %v950_v0  ;;  %v555_v0 = vld [vmem:[#allocation3 + $0x8] sm:$0xff] }
 0x205   : > { %843 = vmatmul.mubr.msk.bf16.vlgmr.msra.gmra.mxu1 %vm339_vm0, %v814_v27 }
 0x2bd   : > { %v481_v28 = vpop.f32.mrf.mxu1 }
 0x2bf   : > { %v838_v29 = vpop.f32.mrf.mxu1 }
 0x2c1   : > { %v484_v30 = vpop.f32.mrf.mxu1 }
 0x2c3   : > { %v839_v31 = vpop.f32.mrf.mxu1 }
 0x2c5   : > { %v529_v32 = vpop.f32.mrf.mxu1 }
 0x2c6   : > { %v535_v33 = vmul.f32 0.35355338, %v529_v32 }
 0x2c7   : > { %v844_v34 = vpop.f32.mrf.mxu1 }
 0x2c8   : > { %v536_v35 = vsel %vm357_vm3, %v535_v33, -1e+30 }
 0x2c9   : > { %v532_v36 = vpop.f32.mrf.mxu1  ;;  %v539_v37 = vsel %vm339_vm0, %v536_v35, -inf }
 0x2ca   : > { %540 = vmax.xlane.f32.xlu1 %v539_v37 }
 0x2cb   : > { %v845_v38 = vpop.f32.mrf.mxu1 }
 0x353   : > { %v541_v40 = vpop.xlane.xlu1 %540 }
 0x354   : > { %v542_v41 = vmax.f32 %v538_v39, %v541_v40 }
 0x356   : > { %616 = vst.msk [vmem:[#allocation2 + $0x8] sm:$0xff] %vm334_vm2, %v542_v41  ;;  %548 = vperm.xlu1 %897, %v542_v41   ;;  %v543_v43 = vsub.f32 %v538_v39, %v542_v41 }
 0x358   : > { %v544_v45 = vmul.f32 1.442695, %v543_v43 }
 0x35a   : > { %902 = vpow2.f32 %v544_v45 }
 0x367   : > { %v903_v47 = vpop.eup %902 }
 0x368   : > { %v556_v1 = vmul.f32 %v903_v47, %v555_v0 }
 0x37a   : > { %427 = vadd.xlane.f32.xlu1 %v426_v44 }
 0x38b   : > { %435 = vperm.xlu1 %897, %v901_v46  }
 0x38f   : > { %566 = vperm.xlu1 %897, %v903_v47  }
 0x3d1   : > { %v549_v48 = vpop.permute.xlu1 %548 }
 0x3d2   : > { %v551_v49 = vsub.f32 %v536_v35, %v549_v48 }
 0x3d4   : > { %v552_v50 = vmul.f32 1.442695, %v551_v49 }
 0x3d6   : > { %904 = vpow2.f32 %v552_v50 }
 0x3e3   : > { %v905_v51 = vpop.eup %904 }
 0x3e4   : > { %v557_v52 = vsel %vm339_vm0, %v905_v51, 0.0  ;;  %v570_v53 = vpack.c.bf16 %v905_v51, %v905_v51 }
 0x3e5   : > { %558 = vadd.xlane.f32.xlu0 %v557_v52 }
 0x3e6   : > { %849 = vmatmul.mubr.msk.bf16.vlgmr.msra.gmra.mxu0 %vm339_vm0, %v570_v53 }
 0x403   : > { %v428_v56 = vpop.xlane.xlu1 %427 }
 0x404   : > { %v429_v57 = vadd.f32 %v428_v56, %v425_v55 }
 0x406   : > { %431 = vst.msk [vmem:[#allocation3] sm:$0xff] %vm334_vm2, %v429_v57 }
 0x407   : > { %v436_v59 = vpop.permute.xlu1 %435 }
 0x408   : > { %v438_v60 = vmul.f32 %v436_v59, %v432_v58 }
 0x40a   : > { %v487_v61 = vadd.f32 %v481_v28, %v438_v60 }
 0x40b   : > { %v567_v6 = vpop.permute.xlu1 %566 }
 0x40c   : > { %488 = vst.msk [vmem:[#allocation4] sm:$0xff] %vm339_vm0, %v487_v61  ;;  %v569_v12 = vmul.f32 %v567_v6, %v563_v11 }
 0x40d   : > { %v620_v62 = vld [vmem:[#allocation3] sm:$0xff] }
 0x40e   : > { %906 = vrcp.f32 %v620_v62 }
 0x413   : > { %v622_v7 = vld [vmem:[#allocation4] sm:$0xff] }
 0x41b   : > { %v907_v63 = vpop.eup %906 }
 0x41c   : > { %625 = vperm.xlu1 %897, %v907_v63  }
 0x46e   : > { %v559_v2 = vpop.xlane.xlu0 %558 }
 0x46f   : > { %v560_v3 = vadd.f32 %v559_v2, %v556_v1 }
 0x471   : > { %561 = vst.msk [vmem:[#allocation3 + $0x8] sm:$0xff] %vm334_vm2, %v560_v3 }
 0x478   : > { %v633_v4 = vld [vmem:[#allocation3 + $0x8] sm:$0xff] }
 0x479   : > { %908 = vrcp.f32 %v633_v4 }
 0x486   : > { %v909_v5 = vpop.eup %908 }
 0x487   : > { %639 = vperm.xlu0 %896, %v909_v5  }
 0x497   : > { %v626_v8 = vpop.permute.xlu1 %625 }
 0x498   : > { %v628_v9 = vmul.f32 %v626_v8, %v622_v7 }
 0x49a   : > { %v629_v10 = vpack.c.bf16 %v628_v9, %v628_v9 }
 0x49c   : > { %631 = vst.msk [vmem:[%s325_s10] sm:$0xf] %vm630_vm5, %v629_v10 }
 0x4a6   : > { %v608_v13 = vpop.f32.mrf.mxu0 }
 0x4a7   : > { %v614_v14 = vadd.f32 %v608_v13, %v569_v12 }
 0x4a8   : > { %v850_v15 = vpop.f32.mrf.mxu0 }
 0x4a9   : > { %615 = vst.msk [vmem:[#allocation4 + $0x8] sm:$0xff] %vm339_vm0, %v614_v14 }
 0x4aa   : > { %v611_v16 = vpop.f32.mrf.mxu0 }
 0x4ac   : > { %v851_v17 = vpop.f32.mrf.mxu0 }
 0x4b0   : > { %v636_v19 = vld [vmem:[#allocation4 + $0x8] sm:$0xff] }
 0x502   : > { %v640_v18 = vpop.permute.xlu0 %639 }
 0x503   : > { %v642_v20 = vmul.f32 %v640_v18, %v636_v19 }
 0x505   : > { %v643_v21 = vpack.c.bf16 %v642_v20, %v642_v20 }
 0x507   : > { %817 = vst.msk [vmem:[%s325_s10 + $0x4] sm:$0xf] %vm630_vm5, %v643_v21 }
 0x508 PF: > { %s13_s16 = sadd.s32 1, %s948_s16   ;;  %s1097_s12 = smov %s940_s14 }
 0x509   : > { %p10_p8 = scmp.ge.s32.totalorder %s13_s16, 6   ;;  %s1098_s13 = smov %s944_s15 }
 0x50a   : > { %s1099_s14 = smov %s1102_s17  ;;  %s1100_s15 = smov %s1106_s18 }
 0x50b   :  { %12 = sbr.rel (!%p10_p8) target bundleno = 3 (0x3), region = 87 }

// kernel: _lambda_.21
= control target key start
LH: loop header
LB: loop body
LE: loop exit
PB: predicated region body
PF: predicated region fallthrough
CT: control target
= control target key end

     0   :  { %vm23_vm0 = vcmask 261120   ;;  %s255_s0 = inlined_call_operand.vmem [shape: bf16[16,32], index: 0, kind: input, shape index: {}]   ;;  %s256_s1 = inlined_call_operand.vmem [shape: f32[1,32], index: 1, kind: input, shape index: {}]   ;;  %s257_s2 = inlined_call_operand.vmem [shape: f32[1,32], index: 2, kind: input, shape index: {}]   ;;  %s258_s3 = inlined_call_operand.vmem [shape: bf16[32,64], index: 3, kind: input, shape index: {}]   ;;  %s259_s4 = inlined_call_operand.hbm [shape: f32[16,64], index: 4, kind: output, shape index: {}]  }
   0x1   :  { %v155_v0 = vld [vmem:[%s255_s0] sm:$0xff]  }
   0x2   :  { %v156_v1 = vunpack.c.l.bf16 %v155_v0  ;;  %v157_v2 = vunpack.c.h.bf16 %v155_v0 }
   0x3   :  { %9 = vsyncpa [#allocation3], 0  ;;  %v174_v15 = vld [vmem:[%s258_s3 + $0x8] sm:$0xff]   ;;  %v202_v16 = vmov 0.0   ;;  %vm203_vm1 = vmmov 0   ;;  %v175_v17 = vld [vmem:[%s258_s3] sm:$0xff]  }
   0x4   :  { %v24_v3 = vsel %vm23_vm0, %v156_v1, 0.0  ;;  %v27_v4 = vsel %vm23_vm0, %v157_v2, 0.0  ;;  %161 = vmatprep.subr.bf16.mxu0 %v202_v16  ;;  %165 = vmatprep.mubr.msk.bf16.mxu0 %vm203_vm1, %v202_v16  ;;  %v149_v26 = vld [vmem:[%s256_s1] ss:$0 sm:$0xff]  ;;  %vm130_vm2 = vcmask 523264   ;;  %s204_s23 = smov [#allocation2]  }
   0x5   :  { %25 = vadd.xlane.f32.xlu0 %v24_v3  ;;  %162 = vmatpush3.bf16.msra.mxu0 %v174_v15  ;;  %v150_v30 = vld [vmem:[%s257_s2] ss:$0 sm:$0xff]  ;;  %s138_s24 = sshll.u32 %s204_s23, 4  ;;  %s139_s24 = int_to_ptr.vmem [resolvable:$true] %s138_s24 }
   0x6   :  { %163 = vmatprep.subr.bf16.mxu0 %v202_v16  ;;  %s180_s1 = scalar_lea.vmem %s139_s24, 256  ;;  %p185_p1 = scmp.lt.s32.totalorder %s139_s24, %s139_s24 }
   0x7   :  { %p181_p0 = scmp.ne.s32.totalorder %s139_s24, %s180_s1  ;;  %p186_p2 = scmp.lt.s32.totalorder %s180_s1, %s180_s1 }
   0x9   :  { %28 = vadd.xlane.f32.xlu0 %v27_v4  ;;  %164 = vmatpush3.bf16.msra.mxu0 %v175_v17  ;;  %p187_p3 = por %p186_p2, %p185_p1 }
   0xb   :  { %p188_p4 = pnand %p187_p3, %p181_p0 }
  0x8e   :  { %v26_v5 = vpop.xlane.xlu0 %25 }
  0x8f   :  { %v31_v6 = vmul.f32 0.03125, %v26_v5 }
  0x91   :  { %v33_v7 = vsub.f32 %v156_v1, %v31_v6 }
  0x92   :  { %v29_v8 = vpop.xlane.xlu0 %28 }
  0x93   :  { %v32_v9 = vmul.f32 0.03125, %v29_v8  ;;  %v35_v10 = vmul.f32 %v33_v7, %v33_v7 }
  0x95   :  { %v34_v11 = vsub.f32 %v157_v2, %v32_v9  ;;  %v37_v12 = vsel %vm23_vm0, %v35_v10, 0.0 }
  0x96   :  { %38 = vadd.xlane.f32.xlu1 %v37_v12 }
  0x97   :  { %v36_v13 = vmul.f32 %v34_v11, %v34_v11 }
  0x99   :  { %v40_v14 = vsel %vm23_vm0, %v36_v13, 0.0 }
  0x9a   :  { %41 = vadd.xlane.f32.xlu1 %v40_v14 }
 0x11f   :  { %v39_v18 = vpop.xlane.xlu1 %38 }
 0x120   :  { %v43_v19 = vmul.f32 0.03125, %v39_v18 }
 0x122   :  { %v45_v20 = vadd.f32 1e-05, %v43_v19 }
 0x123   :  { %v42_v21 = vpop.xlane.xlu1 %41 }
 0x124   :  { %176 = vrsqrt.f32 %v45_v20  ;;  %v44_v22 = vmul.f32 0.03125, %v42_v21 }
 0x126   :  { %v46_v23 = vadd.f32 1e-05, %v44_v22 }
 0x128   :  { %178 = vrsqrt.f32 %v46_v23 }
 0x131   :  { %v177_v24 = vpop.eup %176 }
 0x132   :  { %v49_v25 = vmul.f32 %v177_v24, %v33_v7 }
 0x134   :  { %v58_v29 = vmul.f32 %v149_v26, %v49_v25 }
 0x135   :  { %v179_v27 = vpop.eup %178 }
 0x136   :  { %v50_v28 = vmul.f32 %v179_v27, %v34_v11  ;;  %v67_v32 = vadd.f32 %v150_v30, %v58_v29 }
 0x138   :  { %v59_v31 = vmul.f32 %v149_v26, %v50_v28 }
 0x13a   :  { %v68_v33 = vadd.f32 %v150_v30, %v59_v31 }
 0x13c   :  { %v69_v34 = vpack.c.bf16 %v68_v33, %v67_v32 }
 0x13e   :  { %166 = vmatmul.mubr.msk.bf16.vlgmr.msra.gmra.mxu0 %vm23_vm0, %v69_v34 }
 0x1fe   :  { %v123_v35 = vpop.f32.mrf.mxu0 }
 0x1ff   :  { %131 = vst.msk [vmem:[#allocation2] sm:$0xff] %vm130_vm2, %v123_v35 }
 0x200   :  { %v167_v36 = vpop.f32.mrf.mxu0 }
 0x202   :  { %v126_v37 = vpop.f32.mrf.mxu0 }
 0x203   :  { %132 = vst.msk [vmem:[#allocation2 + $0x8] sm:$0xff] %vm130_vm2, %v126_v37 }
 0x204   :  { %v168_v38 = vpop.f32.mrf.mxu0 }
 0x205   :  { %191 = shalt.err (!%p188_p4)
}
 0x206   :  { %s205_s2 = smov 128   ;;  %s206_s25 = smov 8  }
 0x207   :  { %144 = dma.vmem_to_hbm [thread:$0]  %s139_s24, 256, %s259_s4, [#allocation3], %s205_s2, %s205_s2, %s206_s25  }
 0x208   :  { %200 = dma.done.wait [#allocation3], 256  }
 0x209   :  { %201 = vsyncadd [#allocation3], 4294967040 }
 0x20a   :  { %148 = vsyncpa [#allocation3], 1 }

</bundles_post_ra>
